<compile_context>
chip_gen: v7x
topology: tpu7x:2x2x1
jax: 0.10.0
libtpu: 0.0.40
codegen_flags: <defaults>
</compile_context>

<pallas_src>
import jax
import jax.numpy as jnp
from jax.experimental import pallas as pl
from jax.experimental.pallas import tpu as pltpu


CLASS_PAD = 128  # lane-dense classifier output; sliced back to num_classes


# ------------------------------ Pallas kernel -------------------------------

def _fused_classifier_kernel(x_ref, wb_ref, cb_ref, fw_ref, fb_ref, o_ref,
                             feat_ref):
    """One batch sample per grid step.

    x_ref   : (1, H+2, (W+2)*C_in) f32   padded NHWC input rows of this sample
    wb_ref  : (KH, (W+2)*C_in, W*C_out) bf16  banded conv weights (one per kh)
    cb_ref  : (1, W*C_out) f32           conv bias, tiled over w
    fw_ref  : (H, W*C_out, CLASS_PAD) bf16  classifier weight, flatten-permuted
    fb_ref  : (1, CLASS_PAD) f32         classifier bias (zero-padded)
    o_ref   : (1, 1, CLASS_PAD) f32      logits for this sample
    feat_ref: (H, W*C_out) f32           VMEM scratch for the feature slab
    """
    kh_taps = wb_ref.shape[0]            # 3
    h_out = fw_ref.shape[0]              # H
    assert x_ref.shape[1] == h_out + kh_taps - 1

    # --- network: Conv2d(3x3, pad=1) + bias + ReLU as banded MXU matmuls ----
    acc = jnp.zeros((h_out, wb_ref.shape[2]), jnp.float32)
    for kh in range(kh_taps):                                   # static unroll
        x_rows = x_ref[0, kh:kh + h_out, :].astype(jnp.bfloat16)  # (H, (W+2)*C_in)
        acc = acc + jnp.dot(x_rows, wb_ref[kh],
                            preferred_element_type=jnp.float32)
    # f32 epilogue (bias + ReLU); lane-dense (H, W*C_out) = (16, 128) slab.
    feat_ref[...] = jnp.maximum(acc + cb_ref[...], 0.0)

    # --- classifier: Linear over the NCHW-flattened features ----------------
    # (flatten permutation already folded into fw_ref's columns)
    logits = fb_ref[...]                                        # (1, CLASS_PAD)
    for hh in range(h_out):                                     # static unroll
        row = feat_ref[hh:hh + 1, :].astype(jnp.bfloat16)       # (1, W*C_out)
        logits = logits + jnp.dot(row, fw_ref[hh],
                                  preferred_element_type=jnp.float32)
    o_ref[0] = logits


# --------------------------- weight / input prep ----------------------------

def _prepare_conv_bands(conv_w, w):
    """conv_w (C_out, C_in, KH, KW) -> (KH, (W+KW-1)*C_in, W*C_out) bf16 bands.

    band[kh, (w+kw)*C_in + ci, w*C_out + c] = conv_w[c, ci, kh, kw]
    so that (padded input row h+kh) @ band[kh], summed over kh, is the conv.
    """
    c_out, c_in, kh_n, kw_n = conv_w.shape
    bands = []
    for kh in range(kh_n):
        b_kh = jnp.zeros(((w + kw_n - 1) * c_in, w * c_out), jnp.float32)
        for kw in range(kw_n):
            shift = jnp.eye(w + kw_n - 1, w, k=-kw, dtype=jnp.float32)
            b_kh = b_kh + jnp.kron(shift, conv_w[:, :, kh, kw].T)
        bands.append(b_kh)
    return jnp.stack(bands, axis=0).astype(jnp.bfloat16)


def _prepare_fc(fc_w, fc_b, c_out, h, w):
    """Fold the PyTorch NCHW flatten into the classifier weight and pad classes.

    fw[h, w*C_out + c, j] = fc_w[j, c*H*W + h*W + w]
    """
    num_classes = fc_w.shape[0]
    fw = fc_w.reshape(num_classes, c_out, h, w)       # [j, c, h, w]
    fw = jnp.transpose(fw, (2, 3, 1, 0))              # [h, w, c, j]
    fw = fw.reshape(h, w * c_out, num_classes)
    fw = jnp.pad(fw, ((0, 0), (0, 0), (0, CLASS_PAD - num_classes)))
    fb = jnp.pad(fc_b, (0, CLASS_PAD - num_classes)).reshape(1, CLASS_PAD)
    return fw.astype(jnp.bfloat16), fb.astype(jnp.float32)


# --------------------------------- forward ----------------------------------

def classifier_net_forward(x, params):
    """x: (N, C_in, H, W) float32 (PyTorch NCHW). Returns (N, num_classes) f32."""
    n, c_in, h, w = x.shape
    conv_w, conv_b = params["conv_w"], params["conv_b"]
    fc_w, fc_b = params["fc_w"], params["fc_b"]
    c_out = conv_w.shape[0]
    kh_n, kw_n = conv_w.shape[2], conv_w.shape[3]
    num_classes = fc_w.shape[0]
    assert num_classes <= CLASS_PAD
    wc = w * c_out                                     # 128 -> lane-dense slab
    wp_cin = (w + kw_n - 1) * c_in                     # padded-row width

    # Weight-side prep (cheap, constant-shaped): banded conv weights, tiled
    # conv bias, flatten-permuted + class-padded classifier weight/bias.
    w_bands = _prepare_conv_bands(conv_w, w)                       # bf16
    cb_row = jnp.tile(conv_b.astype(jnp.float32), w).reshape(1, wc)
    fw3, fb_row = _prepare_fc(fc_w, fc_b, c_out, h, w)

    # Activation-side prep: NCHW -> padded NHWC rows (only relayout kept).
    x_nhwc = jnp.transpose(x, (0, 2, 3, 1))
    x_pad = jnp.pad(x_nhwc, ((0, 0), (1, 1), (1, 1), (0, 0)))
    x_rows = x_pad.reshape(n, h + kh_n - 1, wp_cin)

    grid_spec = pltpu.PrefetchScalarGridSpec(
        num_scalar_prefetch=0,
        grid=(n,),                                     # one sample per step
        in_specs=[
            pl.BlockSpec((1, h + kh_n - 1, wp_cin), lambda i: (i, 0, 0)),
            pl.BlockSpec((kh_n, wp_cin, wc), lambda i: (0, 0, 0)),
            pl.BlockSpec((1, wc), lambda i: (0, 0)),
            pl.BlockSpec((h, wc, CLASS_PAD), lambda i: (0, 0, 0)),
            pl.BlockSpec((1, CLASS_PAD), lambda i: (0, 0)),
        ],
        out_specs=pl.BlockSpec((1, 1, CLASS_PAD), lambda i: (i, 0, 0)),
        scratch_shapes=[pltpu.VMEM((h, wc), jnp.float32)],
    )

    out = pl.pallas_call(
        _fused_classifier_kernel,
        out_shape=jax.ShapeDtypeStruct((n, 1, CLASS_PAD), jnp.float32),
        grid_spec=grid_spec,
        compiler_params=pltpu.CompilerParams(
            dimension_semantics=("parallel",),          # v7x: shard over 2 TCs
            vmem_limit_bytes=32 * 1024 * 1024,          # explicit, v7x-safe
        ),
    )(x_rows, w_bands, cb_row, fw3, fb_row)

    return out.reshape(n, CLASS_PAD)[:, :num_classes]


# ----------------------------- params / reference ---------------------------

def init_params(key, c_in=4, c_out=8, h=16, w=16, num_classes=10):
    k1, k2, k3, k4 = jax.random.split(key, 4)
    in_features = c_out * h * w
    return {
        "conv_w": 0.1 * jax.random.normal(k1, (c_out, c_in, 3, 3), jnp.float32),
        "conv_b": 0.1 * jax.random.normal(k2, (c_out,), jnp.float32),
        "fc_w": 0.05 * jax.random.normal(k3, (num_classes, in_features), jnp.float32),
        "fc_b": 0.05 * jax.random.normal(k4, (num_classes,), jnp.float32),
    }


def _reference_forward(x, params):
    """Pure-JAX f32 reference matching the PyTorch module exactly."""
    y = jax.lax.conv_general_dilated(
        x, params["conv_w"], window_strides=(1, 1), padding=((1, 1), (1, 1)),
        dimension_numbers=("NCHW", "OIHW", "NCHW"))
    y = jnp.maximum(y + params["conv_b"].reshape(1, -1, 1, 1), 0.0)
    feat = y.reshape(y.shape[0], -1)                    # nn.Flatten on NCHW
    return feat @ params["fc_w"].T + params["fc_b"]


if __name__ == "__main__":
    key = jax.random.PRNGKey(0)
    kx, kp = jax.random.split(key)
    N, C, H, W = 2, 4, 16, 16
    x = jax.random.normal(kx, (N, C, H, W), jnp.float32)
    params = init_params(kp, c_in=C, h=H, w=W)

    out = jax.jit(classifier_net_forward)(x, params)
    out = jax.block_until_ready(out)
    assert out.shape == (N, 10), out.shape
    assert out.dtype == jnp.float32

    # Correctness vs. f32 reference (bf16 MXU inputs -> loose tolerance).
    ref = _reference_forward(x, params)
    assert jnp.allclose(out, ref, rtol=5e-2, atol=5e-2), (
        float(jnp.max(jnp.abs(out - ref))))
    print("KERNEL_OK")
</pallas_src>

<mosaic_0001>
module attributes {stable_mosaic.version = 11 : i64} {
  func.func @_fused_classifier_kernel(%arg0: i32, %arg1: memref<1x18x72xf32, #tpu.memory_space<vmem>>, %arg2: memref<3x72x128xbf16, #tpu.memory_space<vmem>>, %arg3: memref<1x128xf32, #tpu.memory_space<vmem>>, %arg4: memref<16x128x128xbf16, #tpu.memory_space<vmem>>, %arg5: memref<1x128xf32, #tpu.memory_space<vmem>>, %arg6: memref<1x1x128xf32, #tpu.memory_space<vmem>>, %arg7: memref<16x128xf32, #tpu.memory_space<vmem>>) attributes {dimension_semantics = [#tpu.dimension_semantics<parallel>], iteration_bounds = array<i64: 2>, scalar_prefetch = 0 : i64, scratch_operands = 1 : i64, tpu.core_type = #tpu.core_type<tc>, window_params = [{transform_indices = @transform_0, window_bounds = array<i64: 1, 18, 72>}, {pipeline_mode = #tpu.pipeline_mode<synchronous>, transform_indices = @transform_1, window_bounds = array<i64: 3, 72, 128>}, {pipeline_mode = #tpu.pipeline_mode<synchronous>, transform_indices = @transform_2, window_bounds = array<i64: 1, 128>}, {pipeline_mode = #tpu.pipeline_mode<synchronous>, transform_indices = @transform_3, window_bounds = array<i64: 16, 128, 128>}, {pipeline_mode = #tpu.pipeline_mode<synchronous>, transform_indices = @transform_4, window_bounds = array<i64: 1, 128>}, {transform_indices = @transform_5, window_bounds = array<i64: 1, 1, 128>}]} {
    %cst = arith.constant 0.000000e+00 : f32
    %0 = vector.broadcast %cst : f32 to vector<16x128xf32>
    %c0 = arith.constant 0 : index
    %c0_0 = arith.constant 0 : index
    %c0_1 = arith.constant 0 : index
    %1 = vector.load %arg1[%c0, %c0_0, %c0_1] : memref<1x18x72xf32, #tpu.memory_space<vmem>>, vector<1x16x72xf32>
    %2 = vector.shape_cast %1 : vector<1x16x72xf32> to vector<16x72xf32>
    %3 = arith.truncf %2 : vector<16x72xf32> to vector<16x72xbf16>
    %c0_2 = arith.constant 0 : index
    %c0_3 = arith.constant 0 : index
    %c0_4 = arith.constant 0 : index
    %4 = vector.load %arg2[%c0_2, %c0_3, %c0_4] : memref<3x72x128xbf16, #tpu.memory_space<vmem>>, vector<1x72x128xbf16>
    %5 = vector.shape_cast %4 : vector<1x72x128xbf16> to vector<72x128xbf16>
    %cst_5 = arith.constant dense<0.000000e+00> : vector<16x128xf32>
    %6 = tpu.matmul %3, %5, %cst_5 {dimension_numbers = #tpu.dot_dimension_numbers<[1], [0], [0], [1], [0, 0, 1, 1], [], []>} : vector<16x72xbf16>, vector<72x128xbf16>, vector<16x128xf32> -> vector<16x128xf32>
    %7 = arith.addf %0, %6 : vector<16x128xf32>
    %c0_6 = arith.constant 0 : index
    %c1 = arith.constant 1 : index
    %c0_7 = arith.constant 0 : index
    %8 = vector.load %arg1[%c0_6, %c1, %c0_7] : memref<1x18x72xf32, #tpu.memory_space<vmem>>, vector<1x16x72xf32>
    %9 = vector.shape_cast %8 : vector<1x16x72xf32> to vector<16x72xf32>
    %10 = arith.truncf %9 : vector<16x72xf32> to vector<16x72xbf16>
    %c1_8 = arith.constant 1 : index
    %c0_9 = arith.constant 0 : index
    %c0_10 = arith.constant 0 : index
    %11 = vector.load %arg2[%c1_8, %c0_9, %c0_10] : memref<3x72x128xbf16, #tpu.memory_space<vmem>>, vector<1x72x128xbf16>
    %12 = vector.shape_cast %11 : vector<1x72x128xbf16> to vector<72x128xbf16>
    %cst_11 = arith.constant dense<0.000000e+00> : vector<16x128xf32>
    %13 = tpu.matmul %10, %12, %cst_11 {dimension_numbers = #tpu.dot_dimension_numbers<[1], [0], [0], [1], [0, 0, 1, 1], [], []>} : vector<16x72xbf16>, vector<72x128xbf16>, vector<16x128xf32> -> vector<16x128xf32>
    %14 = arith.addf %7, %13 : vector<16x128xf32>
    %c0_12 = arith.constant 0 : index
    %c2 = arith.constant 2 : index
    %c0_13 = arith.constant 0 : index
    %15 = vector.load %arg1[%c0_12, %c2, %c0_13] : memref<1x18x72xf32, #tpu.memory_space<vmem>>, vector<1x16x72xf32>
    %16 = vector.shape_cast %15 : vector<1x16x72xf32> to vector<16x72xf32>
    %17 = arith.truncf %16 : vector<16x72xf32> to vector<16x72xbf16>
    %c2_14 = arith.constant 2 : index
    %c0_15 = arith.constant 0 : index
    %c0_16 = arith.constant 0 : index
    %18 = vector.load %arg2[%c2_14, %c0_15, %c0_16] : memref<3x72x128xbf16, #tpu.memory_space<vmem>>, vector<1x72x128xbf16>
    %19 = vector.shape_cast %18 : vector<1x72x128xbf16> to vector<72x128xbf16>
    %cst_17 = arith.constant dense<0.000000e+00> : vector<16x128xf32>
    %20 = tpu.matmul %17, %19, %cst_17 {dimension_numbers = #tpu.dot_dimension_numbers<[1], [0], [0], [1], [0, 0, 1, 1], [], []>} : vector<16x72xbf16>, vector<72x128xbf16>, vector<16x128xf32> -> vector<16x128xf32>
    %21 = arith.addf %14, %20 : vector<16x128xf32>
    %c0_18 = arith.constant 0 : index
    %c0_19 = arith.constant 0 : index
    %22 = vector.load %arg3[%c0_18, %c0_19] : memref<1x128xf32, #tpu.memory_space<vmem>>, vector<1x128xf32>
    %23 = vector.broadcast %22 : vector<1x128xf32> to vector<16x128xf32>
    %24 = arith.addf %21, %23 : vector<16x128xf32>
    %cst_20 = arith.constant 0.000000e+00 : f32
    %25 = vector.broadcast %cst_20 : f32 to vector<16x128xf32>
    %26 = arith.maximumf %24, %25 : vector<16x128xf32>
    %c0_21 = arith.constant 0 : index
    %c0_22 = arith.constant 0 : index
    %27 = vector.load %arg7[%c0_21, %c0_22] : memref<16x128xf32, #tpu.memory_space<vmem>>, vector<16x128xf32>
    tpu.vector_store %arg7[%c0_21, %c0_22], %26 {strides = array<i32>} : memref<16x128xf32, #tpu.memory_space<vmem>>, vector<16x128xf32>,
    %c0_23 = arith.constant 0 : index
    %c0_24 = arith.constant 0 : index
    %28 = vector.load %arg5[%c0_23, %c0_24] : memref<1x128xf32, #tpu.memory_space<vmem>>, vector<1x128xf32>
    %c0_25 = arith.constant 0 : index
    %c0_26 = arith.constant 0 : index
    %29 = vector.load %arg7[%c0_25, %c0_26] : memref<16x128xf32, #tpu.memory_space<vmem>>, vector<1x128xf32>
    %30 = arith.truncf %29 : vector<1x128xf32> to vector<1x128xbf16>
    %c0_27 = arith.constant 0 : index
    %c0_28 = arith.constant 0 : index
    %c0_29 = arith.constant 0 : index
    %31 = vector.load %arg4[%c0_27, %c0_28, %c0_29] : memref<16x128x128xbf16, #tpu.memory_space<vmem>>, vector<1x128x128xbf16>
    %32 = vector.shape_cast %31 : vector<1x128x128xbf16> to vector<128x128xbf16>
    %cst_30 = arith.constant dense<0.000000e+00> : vector<1x128xf32>
    %33 = tpu.matmul %30, %32, %cst_30 {dimension_numbers = #tpu.dot_dimension_numbers<[1], [0], [0], [1], [0, 0, 1, 1], [], []>} : vector<1x128xbf16>, vector<128x128xbf16>, vector<1x128xf32> -> vector<1x128xf32>
    %34 = arith.addf %28, %33 : vector<1x128xf32>
    %c1_31 = arith.constant 1 : index
    %c0_32 = arith.constant 0 : index
    %35 = vector.load %arg7[%c1_31, %c0_32] : memref<16x128xf32, #tpu.memory_space<vmem>>, vector<1x128xf32>
    %36 = arith.truncf %35 : vector<1x128xf32> to vector<1x128xbf16>
    %c1_33 = arith.constant 1 : index
    %c0_34 = arith.constant 0 : index
    %c0_35 = arith.constant 0 : index
    %37 = vector.load %arg4[%c1_33, %c0_34, %c0_35] : memref<16x128x128xbf16, #tpu.memory_space<vmem>>, vector<1x128x128xbf16>
    %38 = vector.shape_cast %37 : vector<1x128x128xbf16> to vector<128x128xbf16>
    %cst_36 = arith.constant dense<0.000000e+00> : vector<1x128xf32>
    %39 = tpu.matmul %36, %38, %cst_36 {dimension_numbers = #tpu.dot_dimension_numbers<[1], [0], [0], [1], [0, 0, 1, 1], [], []>} : vector<1x128xbf16>, vector<128x128xbf16>, vector<1x128xf32> -> vector<1x128xf32>
    %40 = arith.addf %34, %39 : vector<1x128xf32>
    %c2_37 = arith.constant 2 : index
    %c0_38 = arith.constant 0 : index
    %41 = vector.load %arg7[%c2_37, %c0_38] : memref<16x128xf32, #tpu.memory_space<vmem>>, vector<1x128xf32>
    %42 = arith.truncf %41 : vector<1x128xf32> to vector<1x128xbf16>
    %c2_39 = arith.constant 2 : index
    %c0_40 = arith.constant 0 : index
    %c0_41 = arith.constant 0 : index
    %43 = vector.load %arg4[%c2_39, %c0_40, %c0_41] : memref<16x128x128xbf16, #tpu.memory_space<vmem>>, vector<1x128x128xbf16>
    %44 = vector.shape_cast %43 : vector<1x128x128xbf16> to vector<128x128xbf16>
    %cst_42 = arith.constant dense<0.000000e+00> : vector<1x128xf32>
    %45 = tpu.matmul %42, %44, %cst_42 {dimension_numbers = #tpu.dot_dimension_numbers<[1], [0], [0], [1], [0, 0, 1, 1], [], []>} : vector<1x128xbf16>, vector<128x128xbf16>, vector<1x128xf32> -> vector<1x128xf32>
    %46 = arith.addf %40, %45 : vector<1x128xf32>
    %c3 = arith.constant 3 : index
    %c0_43 = arith.constant 0 : index
    %47 = vector.load %arg7[%c3, %c0_43] : memref<16x128xf32, #tpu.memory_space<vmem>>, vector<1x128xf32>
    %48 = arith.truncf %47 : vector<1x128xf32> to vector<1x128xbf16>
    %c3_44 = arith.constant 3 : index
    %c0_45 = arith.constant 0 : index
    %c0_46 = arith.constant 0 : index
    %49 = vector.load %arg4[%c3_44, %c0_45, %c0_46] : memref<16x128x128xbf16, #tpu.memory_space<vmem>>, vector<1x128x128xbf16>
    %50 = vector.shape_cast %49 : vector<1x128x128xbf16> to vector<128x128xbf16>
    %cst_47 = arith.constant dense<0.000000e+00> : vector<1x128xf32>
    %51 = tpu.matmul %48, %50, %cst_47 {dimension_numbers = #tpu.dot_dimension_numbers<[1], [0], [0], [1], [0, 0, 1, 1], [], []>} : vector<1x128xbf16>, vector<128x128xbf16>, vector<1x128xf32> -> vector<1x128xf32>
    %52 = arith.addf %46, %51 : vector<1x128xf32>
    %c4 = arith.constant 4 : index
    %c0_48 = arith.constant 0 : index
    %53 = vector.load %arg7[%c4, %c0_48] : memref<16x128xf32, #tpu.memory_space<vmem>>, vector<1x128xf32>
    %54 = arith.truncf %53 : vector<1x128xf32> to vector<1x128xbf16>
    %c4_49 = arith.constant 4 : index
    %c0_50 = arith.constant 0 : index
    %c0_51 = arith.constant 0 : index
    %55 = vector.load %arg4[%c4_49, %c0_50, %c0_51] : memref<16x128x128xbf16, #tpu.memory_space<vmem>>, vector<1x128x128xbf16>
    %56 = vector.shape_cast %55 : vector<1x128x128xbf16> to vector<128x128xbf16>
    %cst_52 = arith.constant dense<0.000000e+00> : vector<1x128xf32>
    %57 = tpu.matmul %54, %56, %cst_52 {dimension_numbers = #tpu.dot_dimension_numbers<[1], [0], [0], [1], [0, 0, 1, 1], [], []>} : vector<1x128xbf16>, vector<128x128xbf16>, vector<1x128xf32> -> vector<1x128xf32>
    %58 = arith.addf %52, %57 : vector<1x128xf32>
    %c5 = arith.constant 5 : index
    %c0_53 = arith.constant 0 : index
    %59 = vector.load %arg7[%c5, %c0_53] : memref<16x128xf32, #tpu.memory_space<vmem>>, vector<1x128xf32>
    %60 = arith.truncf %59 : vector<1x128xf32> to vector<1x128xbf16>
    %c5_54 = arith.constant 5 : index
    %c0_55 = arith.constant 0 : index
    %c0_56 = arith.constant 0 : index
    %61 = vector.load %arg4[%c5_54, %c0_55, %c0_56] : memref<16x128x128xbf16, #tpu.memory_space<vmem>>, vector<1x128x128xbf16>
    %62 = vector.shape_cast %61 : vector<1x128x128xbf16> to vector<128x128xbf16>
    %cst_57 = arith.constant dense<0.000000e+00> : vector<1x128xf32>
    %63 = tpu.matmul %60, %62, %cst_57 {dimension_numbers = #tpu.dot_dimension_numbers<[1], [0], [0], [1], [0, 0, 1, 1], [], []>} : vector<1x128xbf16>, vector<128x128xbf16>, vector<1x128xf32> -> vector<1x128xf32>
    %64 = arith.addf %58, %63 : vector<1x128xf32>
    %c6 = arith.constant 6 : index
    %c0_58 = arith.constant 0 : index
    %65 = vector.load %arg7[%c6, %c0_58] : memref<16x128xf32, #tpu.memory_space<vmem>>, vector<1x128xf32>
    %66 = arith.truncf %65 : vector<1x128xf32> to vector<1x128xbf16>
    %c6_59 = arith.constant 6 : index
    %c0_60 = arith.constant 0 : index
    %c0_61 = arith.constant 0 : index
    %67 = vector.load %arg4[%c6_59, %c0_60, %c0_61] : memref<16x128x128xbf16, #tpu.memory_space<vmem>>, vector<1x128x128xbf16>
    %68 = vector.shape_cast %67 : vector<1x128x128xbf16> to vector<128x128xbf16>
    %cst_62 = arith.constant dense<0.000000e+00> : vector<1x128xf32>
    %69 = tpu.matmul %66, %68, %cst_62 {dimension_numbers = #tpu.dot_dimension_numbers<[1], [0], [0], [1], [0, 0, 1, 1], [], []>} : vector<1x128xbf16>, vector<128x128xbf16>, vector<1x128xf32> -> vector<1x128xf32>
    %70 = arith.addf %64, %69 : vector<1x128xf32>
    %c7 = arith.constant 7 : index
    %c0_63 = arith.constant 0 : index
    %71 = vector.load %arg7[%c7, %c0_63] : memref<16x128xf32, #tpu.memory_space<vmem>>, vector<1x128xf32>
    %72 = arith.truncf %71 : vector<1x128xf32> to vector<1x128xbf16>
    %c7_64 = arith.constant 7 : index
    %c0_65 = arith.constant 0 : index
    %c0_66 = arith.constant 0 : index
    %73 = vector.load %arg4[%c7_64, %c0_65, %c0_66] : memref<16x128x128xbf16, #tpu.memory_space<vmem>>, vector<1x128x128xbf16>
    %74 = vector.shape_cast %73 : vector<1x128x128xbf16> to vector<128x128xbf16>
    %cst_67 = arith.constant dense<0.000000e+00> : vector<1x128xf32>
    %75 = tpu.matmul %72, %74, %cst_67 {dimension_numbers = #tpu.dot_dimension_numbers<[1], [0], [0], [1], [0, 0, 1, 1], [], []>} : vector<1x128xbf16>, vector<128x128xbf16>, vector<1x128xf32> -> vector<1x128xf32>
    %76 = arith.addf %70, %75 : vector<1x128xf32>
    %c8 = arith.constant 8 : index
    %c0_68 = arith.constant 0 : index
    %77 = vector.load %arg7[%c8, %c0_68] : memref<16x128xf32, #tpu.memory_space<vmem>>, vector<1x128xf32>
    %78 = arith.truncf %77 : vector<1x128xf32> to vector<1x128xbf16>
    %c8_69 = arith.constant 8 : index
    %c0_70 = arith.constant 0 : index
    %c0_71 = arith.constant 0 : index
    %79 = vector.load %arg4[%c8_69, %c0_70, %c0_71] : memref<16x128x128xbf16, #tpu.memory_space<vmem>>, vector<1x128x128xbf16>
    %80 = vector.shape_cast %79 : vector<1x128x128xbf16> to vector<128x128xbf16>
    %cst_72 = arith.constant dense<0.000000e+00> : vector<1x128xf32>
    %81 = tpu.matmul %78, %80, %cst_72 {dimension_numbers = #tpu.dot_dimension_numbers<[1], [0], [0], [1], [0, 0, 1, 1], [], []>} : vector<1x128xbf16>, vector<128x128xbf16>, vector<1x128xf32> -> vector<1x128xf32>
    %82 = arith.addf %76, %81 : vector<1x128xf32>
    %c9 = arith.constant 9 : index
    %c0_73 = arith.constant 0 : index
    %83 = vector.load %arg7[%c9, %c0_73] : memref<16x128xf32, #tpu.memory_space<vmem>>, vector<1x128xf32>
    %84 = arith.truncf %83 : vector<1x128xf32> to vector<1x128xbf16>
    %c9_74 = arith.constant 9 : index
    %c0_75 = arith.constant 0 : index
    %c0_76 = arith.constant 0 : index
    %85 = vector.load %arg4[%c9_74, %c0_75, %c0_76] : memref<16x128x128xbf16, #tpu.memory_space<vmem>>, vector<1x128x128xbf16>
    %86 = vector.shape_cast %85 : vector<1x128x128xbf16> to vector<128x128xbf16>
    %cst_77 = arith.constant dense<0.000000e+00> : vector<1x128xf32>
    %87 = tpu.matmul %84, %86, %cst_77 {dimension_numbers = #tpu.dot_dimension_numbers<[1], [0], [0], [1], [0, 0, 1, 1], [], []>} : vector<1x128xbf16>, vector<128x128xbf16>, vector<1x128xf32> -> vector<1x128xf32>
    %88 = arith.addf %82, %87 : vector<1x128xf32>
    %c10 = arith.constant 10 : index
    %c0_78 = arith.constant 0 : index
    %89 = vector.load %arg7[%c10, %c0_78] : memref<16x128xf32, #tpu.memory_space<vmem>>, vector<1x128xf32>
    %90 = arith.truncf %89 : vector<1x128xf32> to vector<1x128xbf16>
    %c10_79 = arith.constant 10 : index
    %c0_80 = arith.constant 0 : index
    %c0_81 = arith.constant 0 : index
    %91 = vector.load %arg4[%c10_79, %c0_80, %c0_81] : memref<16x128x128xbf16, #tpu.memory_space<vmem>>, vector<1x128x128xbf16>
    %92 = vector.shape_cast %91 : vector<1x128x128xbf16> to vector<128x128xbf16>
    %cst_82 = arith.constant dense<0.000000e+00> : vector<1x128xf32>
    %93 = tpu.matmul %90, %92, %cst_82 {dimension_numbers = #tpu.dot_dimension_numbers<[1], [0], [0], [1], [0, 0, 1, 1], [], []>} : vector<1x128xbf16>, vector<128x128xbf16>, vector<1x128xf32> -> vector<1x128xf32>
    %94 = arith.addf %88, %93 : vector<1x128xf32>
    %c11 = arith.constant 11 : index
    %c0_83 = arith.constant 0 : index
    %95 = vector.load %arg7[%c11, %c0_83] : memref<16x128xf32, #tpu.memory_space<vmem>>, vector<1x128xf32>
    %96 = arith.truncf %95 : vector<1x128xf32> to vector<1x128xbf16>
    %c11_84 = arith.constant 11 : index
    %c0_85 = arith.constant 0 : index
    %c0_86 = arith.constant 0 : index
    %97 = vector.load %arg4[%c11_84, %c0_85, %c0_86] : memref<16x128x128xbf16, #tpu.memory_space<vmem>>, vector<1x128x128xbf16>
    %98 = vector.shape_cast %97 : vector<1x128x128xbf16> to vector<128x128xbf16>
    %cst_87 = arith.constant dense<0.000000e+00> : vector<1x128xf32>
    %99 = tpu.matmul %96, %98, %cst_87 {dimension_numbers = #tpu.dot_dimension_numbers<[1], [0], [0], [1], [0, 0, 1, 1], [], []>} : vector<1x128xbf16>, vector<128x128xbf16>, vector<1x128xf32> -> vector<1x128xf32>
    %100 = arith.addf %94, %99 : vector<1x128xf32>
    %c12 = arith.constant 12 : index
    %c0_88 = arith.constant 0 : index
    %101 = vector.load %arg7[%c12, %c0_88] : memref<16x128xf32, #tpu.memory_space<vmem>>, vector<1x128xf32>
    %102 = arith.truncf %101 : vector<1x128xf32> to vector<1x128xbf16>
    %c12_89 = arith.constant 12 : index
    %c0_90 = arith.constant 0 : index
    %c0_91 = arith.constant 0 : index
    %103 = vector.load %arg4[%c12_89, %c0_90, %c0_91] : memref<16x128x128xbf16, #tpu.memory_space<vmem>>, vector<1x128x128xbf16>
    %104 = vector.shape_cast %103 : vector<1x128x128xbf16> to vector<128x128xbf16>
    %cst_92 = arith.constant dense<0.000000e+00> : vector<1x128xf32>
    %105 = tpu.matmul %102, %104, %cst_92 {dimension_numbers = #tpu.dot_dimension_numbers<[1], [0], [0], [1], [0, 0, 1, 1], [], []>} : vector<1x128xbf16>, vector<128x128xbf16>, vector<1x128xf32> -> vector<1x128xf32>
    %106 = arith.addf %100, %105 : vector<1x128xf32>
    %c13 = arith.constant 13 : index
    %c0_93 = arith.constant 0 : index
    %107 = vector.load %arg7[%c13, %c0_93] : memref<16x128xf32, #tpu.memory_space<vmem>>, vector<1x128xf32>
    %108 = arith.truncf %107 : vector<1x128xf32> to vector<1x128xbf16>
    %c13_94 = arith.constant 13 : index
    %c0_95 = arith.constant 0 : index
    %c0_96 = arith.constant 0 : index
    %109 = vector.load %arg4[%c13_94, %c0_95, %c0_96] : memref<16x128x128xbf16, #tpu.memory_space<vmem>>, vector<1x128x128xbf16>
    %110 = vector.shape_cast %109 : vector<1x128x128xbf16> to vector<128x128xbf16>
    %cst_97 = arith.constant dense<0.000000e+00> : vector<1x128xf32>
    %111 = tpu.matmul %108, %110, %cst_97 {dimension_numbers = #tpu.dot_dimension_numbers<[1], [0], [0], [1], [0, 0, 1, 1], [], []>} : vector<1x128xbf16>, vector<128x128xbf16>, vector<1x128xf32> -> vector<1x128xf32>
    %112 = arith.addf %106, %111 : vector<1x128xf32>
    %c14 = arith.constant 14 : index
    %c0_98 = arith.constant 0 : index
    %113 = vector.load %arg7[%c14, %c0_98] : memref<16x128xf32, #tpu.memory_space<vmem>>, vector<1x128xf32>
    %114 = arith.truncf %113 : vector<1x128xf32> to vector<1x128xbf16>
    %c14_99 = arith.constant 14 : index
    %c0_100 = arith.constant 0 : index
    %c0_101 = arith.constant 0 : index
    %115 = vector.load %arg4[%c14_99, %c0_100, %c0_101] : memref<16x128x128xbf16, #tpu.memory_space<vmem>>, vector<1x128x128xbf16>
    %116 = vector.shape_cast %115 : vector<1x128x128xbf16> to vector<128x128xbf16>
    %cst_102 = arith.constant dense<0.000000e+00> : vector<1x128xf32>
    %117 = tpu.matmul %114, %116, %cst_102 {dimension_numbers = #tpu.dot_dimension_numbers<[1], [0], [0], [1], [0, 0, 1, 1], [], []>} : vector<1x128xbf16>, vector<128x128xbf16>, vector<1x128xf32> -> vector<1x128xf32>
    %118 = arith.addf %112, %117 : vector<1x128xf32>
    %c15 = arith.constant 15 : index
    %c0_103 = arith.constant 0 : index
    %119 = vector.load %arg7[%c15, %c0_103] : memref<16x128xf32, #tpu.memory_space<vmem>>, vector<1x128xf32>
    %120 = arith.truncf %119 : vector<1x128xf32> to vector<1x128xbf16>
    %c15_104 = arith.constant 15 : index
    %c0_105 = arith.constant 0 : index
    %c0_106 = arith.constant 0 : index
    %121 = vector.load %arg4[%c15_104, %c0_105, %c0_106] : memref<16x128x128xbf16, #tpu.memory_space<vmem>>, vector<1x128x128xbf16>
    %122 = vector.shape_cast %121 : vector<1x128x128xbf16> to vector<128x128xbf16>
    %cst_107 = arith.constant dense<0.000000e+00> : vector<1x128xf32>
    %123 = tpu.matmul %120, %122, %cst_107 {dimension_numbers = #tpu.dot_dimension_numbers<[1], [0], [0], [1], [0, 0, 1, 1], [], []>} : vector<1x128xbf16>, vector<128x128xbf16>, vector<1x128xf32> -> vector<1x128xf32>
    %124 = arith.addf %118, %123 : vector<1x128xf32>
    %c0_108 = arith.constant 0 : index
    %c0_109 = arith.constant 0 : index
    %c0_110 = arith.constant 0 : index
    %125 = vector.load %arg6[%c0_108, %c0_109, %c0_110] : memref<1x1x128xf32, #tpu.memory_space<vmem>>, vector<1x1x128xf32>
    %126 = vector.shape_cast %125 : vector<1x1x128xf32> to vector<1x128xf32>
    %127 = vector.shape_cast %124 : vector<1x128xf32> to vector<1x1x128xf32>
    tpu.vector_store %arg6[%c0_108, %c0_109, %c0_110], %127 {strides = array<i32>} : memref<1x1x128xf32, #tpu.memory_space<vmem>>, vector<1x1x128xf32>,
    return
  }
  func.func @transform_0(%arg0: i32) -> (i32, i32, i32) {
    %c0_i32 = arith.constant 0 : i32
    %c0_i32_0 = arith.constant 0 : i32
    %c0_i32_1 = arith.constant 0 : i32
    return %arg0, %c0_i32, %c0_i32_0 : i32, i32, i32
  }
  func.func @transform_1(%arg0: i32) -> (i32, i32, i32) {
    %c0_i32 = arith.constant 0 : i32
    %c0_i32_0 = arith.constant 0 : i32
    %c0_i32_1 = arith.constant 0 : i32
    %c0_i32_2 = arith.constant 0 : i32
    return %c0_i32, %c0_i32_0, %c0_i32_1 : i32, i32, i32
  }
  func.func @transform_2(%arg0: i32) -> (i32, i32) {
    %c0_i32 = arith.constant 0 : i32
    %c0_i32_0 = arith.constant 0 : i32
    %c0_i32_1 = arith.constant 0 : i32
    return %c0_i32, %c0_i32_0 : i32, i32
  }
  func.func @transform_3(%arg0: i32) -> (i32, i32, i32) {
    %c0_i32 = arith.constant 0 : i32
    %c0_i32_0 = arith.constant 0 : i32
    %c0_i32_1 = arith.constant 0 : i32
    %c0_i32_2 = arith.constant 0 : i32
    return %c0_i32, %c0_i32_0, %c0_i32_1 : i32, i32, i32
  }
  func.func @transform_4(%arg0: i32) -> (i32, i32) {
    %c0_i32 = arith.constant 0 : i32
    %c0_i32_0 = arith.constant 0 : i32
    %c0_i32_1 = arith.constant 0 : i32
    return %c0_i32, %c0_i32_0 : i32, i32
  }
  func.func @transform_5(%arg0: i32) -> (i32, i32, i32) {
    %c0_i32 = arith.constant 0 : i32
    %c0_i32_0 = arith.constant 0 : i32
    %c0_i32_1 = arith.constant 0 : i32
    return %arg0, %c0_i32, %c0_i32_0 : i32, i32, i32
  }
}

</mosaic_0001>

<bundles_post_ra>
// kernel: tile.8
= control target key start
LH: loop header
LB: loop body
LE: loop exit
PB: predicated region body
PF: predicated region fallthrough
CT: control target
= control target key end

     0   :  { %s28_s0 = inlined_call_operand.vmem [shape: f32[8], index: 0, kind: input, shape index: {}]   ;;  %s29_s1 = inlined_call_operand.vmem [shape: f32[16,8], index: 1, kind: output, shape index: {}]  }
   0x1   :  { %v4_v0 = vld [vmem:[%s28_s0] ss:$0 sm:$0xff] }
   0x2   :  { %5 = vst [vmem:[%s29_s1] sm:$0xff] %v4_v0  ;;  %8 = vst [vmem:[%s29_s1 + $0x8] sm:$0xff] %v4_v0 }

// kernel: tile.9
= control target key start
LH: loop header
LB: loop body
LE: loop exit
PB: predicated region body
PF: predicated region fallthrough
CT: control target
= control target key end

     0   :  { %s131_s10 = smov 120   ;;  %s132_s11 = smov 104   ;;  %vm3_vm0 = vcmask 64512   ;;  %vm9_vm1 = vcmask 1048512   ;;  %vm15_vm2 = vcmask 982912   ;;  %vm21_vm3 = vcmask 917312   ;;  %s207_s0 = inlined_call_operand.vmem [shape: f32[16,8], index: 0, kind: input, shape index: {}]   ;;  %s208_s1 = inlined_call_operand.vmem [shape: f32[1,128], index: 1, kind: output, shape index: {}]  }
   0x1   :  { %v101_v0 = vld [vmem:[%s207_s0 + $0xf] sm:$0x1]   ;;  %v103_v1 = vld [vmem:[%s207_s0 + $0xd] sm:$0x1]   ;;  %v102_v2 = vld [vmem:[%s207_s0 + $0xe] sm:$0x1]  }
   0x2   :  { %7 = vrot.lane.b32.xlu0 %v101_v0, %s131_s10  ;;  %19 = vrot.lane.b32.xlu1 %v103_v1, %s132_s11  ;;  %v104_v3 = vld [vmem:[%s207_s0 + $0xc] sm:$0x1]   ;;  %s133_s16 = smov 112   ;;  %s134_s17 = smov 96   ;;  %v105_v4 = vld [vmem:[%s207_s0 + $0xb] sm:$0x1]  }
   0x3   :  { %v106_v5 = vld [vmem:[%s207_s0 + $0xa] sm:$0x1]   ;;  %v2_v6 = vld [vmem:[%s207_s0] sm:$0x1]   ;;  %s135_s24 = smov 88   ;;  %s136_s25 = smov 80  }
   0x4   :  { %4 = vst.msk [vmem:[#allocation0] sm:$0x1] %vm3_vm0, %v2_v6   ;;  %v107_v7 = vld [vmem:[%s207_s0 + $0x9] sm:$0x1]   ;;  %v108_v8 = vld [vmem:[%s207_s0 + $0x8] sm:$0x1]  }
   0x5   :  { %s137_s30 = smov 72   ;;  %s138_s2 = smov 64   ;;  %v109_v9 = vld [vmem:[%s207_s0 + $0x7] sm:$0x1]   ;;  %v110_v10 = vld [vmem:[%s207_s0 + $0x6] sm:$0x1]  }
   0x6   :  { %13 = vrot.lane.b32.xlu0 %v102_v2, %s133_s16  ;;  %25 = vrot.lane.b32.xlu1 %v104_v3, %s134_s17  ;;  %s139_s7 = smov 56   ;;  %s140_s8 = smov 48   ;;  %v111_v11 = vld [vmem:[%s207_s0 + $0x5] sm:$0x1]   ;;  %v112_v12 = vld [vmem:[%s207_s0 + $0x4] sm:$0x1]  }
   0x7   :  { %s141_s13 = smov 40   ;;  %s142_s14 = smov 32   ;;  %v113_v13 = vld [vmem:[%s207_s0 + $0x3] sm:$0x1]   ;;  %v114_v14 = vld [vmem:[%s207_s0 + $0x2] sm:$0x1]  }
   0x8   :  { %s143_s19 = smov 24   ;;  %s144_s20 = smov 16   ;;  %v115_v15 = vld [vmem:[%s207_s0 + $0x1] sm:$0x1]   ;;  %vm27_vm4 = vcmask 851712   ;;  %vm33_vm5 = vcmask 786112  }
   0x9   :  { %s145_s0 = smov 8   ;;  %vm39_vm6 = vcmask 720512   ;;  %vm45_vm7 = vcmask 654912   ;;  %vm51_vm8 = vcmask 589312   ;;  %vm57_vm9 = vcmask 523712  }
   0xa   :  { %31 = vrot.lane.b32.xlu0 %v105_v4, %s135_s24  ;;  %37 = vrot.lane.b32.xlu1 %v106_v5, %s136_s25  ;;  %vm63_vm10 = vcmask 458112   ;;  %vm69_vm11 = vcmask 392512   ;;  %vm75_vm12 = vcmask 326912   ;;  %vm81_vm13 = vcmask 261312  }
   0xb   :  { %vm87_vm14 = vcmask 195712   ;;  %vm93_vm15 = vcmask 130112  }
   0xe   :  { %43 = vrot.lane.b32.xlu0 %v107_v7, %s137_s30  ;;  %49 = vrot.lane.b32.xlu1 %v108_v8, %s138_s2 }
  0x12   :  { %55 = vrot.lane.b32.xlu0 %v109_v9, %s139_s7  ;;  %61 = vrot.lane.b32.xlu1 %v110_v10, %s140_s8 }
  0x16   :  { %67 = vrot.lane.b32.xlu0 %v111_v11, %s141_s13  ;;  %73 = vrot.lane.b32.xlu1 %v112_v12, %s142_s14 }
  0x1a   :  { %79 = vrot.lane.b32.xlu0 %v113_v13, %s143_s19  ;;  %85 = vrot.lane.b32.xlu1 %v114_v14, %s144_s20 }
  0x1e   :  { %91 = vrot.lane.b32.xlu0 %v115_v15, %s145_s0 }
  0x74   :  { %v8_v16 = vpop.permute.xlu0 %7   ;;  %v20_v17 = vpop.permute.xlu1 %19  }
  0x75   :  { %10 = vst.msk [vmem:[#allocation0] sm:$0x1] %vm9_vm1, %v8_v16  }
  0x78   :  { %v14_v18 = vpop.permute.xlu0 %13   ;;  %v26_v19 = vpop.permute.xlu1 %25  }
  0x79   :  { %16 = vst.msk [vmem:[#allocation0] sm:$0x1] %vm15_vm2, %v14_v18  }
  0x7a   :  { %22 = vst.msk [vmem:[#allocation0] sm:$0x1] %vm21_vm3, %v20_v17  }
  0x7b   :  { %28 = vst.msk [vmem:[#allocation0] sm:$0x1] %vm27_vm4, %v26_v19  }
  0x7c   :  { %v32_v20 = vpop.permute.xlu0 %31   ;;  %v38_v21 = vpop.permute.xlu1 %37  }
  0x7d   :  { %34 = vst.msk [vmem:[#allocation0] sm:$0x1] %vm33_vm5, %v32_v20  }
  0x7e   :  { %40 = vst.msk [vmem:[#allocation0] sm:$0x1] %vm39_vm6, %v38_v21  }
  0x80   :  { %v44_v22 = vpop.permute.xlu0 %43   ;;  %v50_v23 = vpop.permute.xlu1 %49  }
  0x81   :  { %46 = vst.msk [vmem:[#allocation0] sm:$0x1] %vm45_vm7, %v44_v22  }
  0x82   :  { %52 = vst.msk [vmem:[#allocation0] sm:$0x1] %vm51_vm8, %v50_v23  }
  0x84   :  { %v56_v24 = vpop.permute.xlu0 %55   ;;  %v62_v25 = vpop.permute.xlu1 %61  }
  0x85   :  { %58 = vst.msk [vmem:[#allocation0] sm:$0x1] %vm57_vm9, %v56_v24  }
  0x86   :  { %64 = vst.msk [vmem:[#allocation0] sm:$0x1] %vm63_vm10, %v62_v25  }
  0x88   :  { %v68_v26 = vpop.permute.xlu0 %67   ;;  %v74_v27 = vpop.permute.xlu1 %73  }
  0x89   :  { %70 = vst.msk [vmem:[#allocation0] sm:$0x1] %vm69_vm11, %v68_v26  }
  0x8a   :  { %76 = vst.msk [vmem:[#allocation0] sm:$0x1] %vm75_vm12, %v74_v27  }
  0x8c   :  { %v80_v28 = vpop.permute.xlu0 %79   ;;  %v86_v29 = vpop.permute.xlu1 %85  }
  0x8d   :  { %82 = vst.msk [vmem:[#allocation0] sm:$0x1] %vm81_vm13, %v80_v28  }
  0x8e   :  { %88 = vst.msk [vmem:[#allocation0] sm:$0x1] %vm87_vm14, %v86_v29  }
  0x90   :  { %v92_v30 = vpop.permute.xlu0 %91  }
  0x91   :  { %94 = vst.msk [vmem:[#allocation0] sm:$0x1] %vm93_vm15, %v92_v30  }
  0x98   :  { %v98_v31 = vld [vmem:[#allocation0] sm:$0x1] }
  0x99   :  { %100 = vst [vmem:[%s208_s1] sm:$0x1] %v98_v31 }

// kernel: classifier_net_forward.1
= control target key start
LH: loop header
LB: loop body
LE: loop exit
PB: predicated region body
PF: predicated region fallthrough
CT: control target
= control target key end

     0   :  { %10 = vsyncpa [#allocation4], 0  ;;  %s4301_s0 = inlined_call_operand.vmem [shape: f32[2,18,72], index: 0, kind: input, shape index: {}]   ;;  %s4302_s1 = inlined_call_operand.vmem [shape: bf16[3,72,128], index: 1, kind: input, shape index: {}]   ;;  %s4303_s2 = inlined_call_operand.vmem [shape: f32[1,128], index: 2, kind: input, shape index: {}]   ;;  %s4304_s3 = inlined_call_operand.vmem [shape: bf16[16,128,128], index: 3, kind: input, shape index: {}]   ;;  %s4305_s4 = inlined_call_operand.vmem [shape: f32[1,128], index: 4, kind: input, shape index: {}]   ;;  %s4306_s5 = inlined_call_operand.hbm [shape: f32[2,1,128], index: 5, kind: output, shape index: {}]  }
   0x1   :  { %12 = vsyncpa [#allocation4 + $0x1], 0  ;;  %s3574_s18 = smov 0   ;;  %s3576_s19 = smov 0  }
   0x2   :  { %s3578_s20 = smov 0   ;;  %s3580_s21 = smov 0  }
   0x3 LB: > { %s3595_s22 = sadd.s32 4294967295, %s3539_s21   ;;  %s2297_s23 = sadd.s32 4294967294, %s3539_s21   ;;  %s3539_s21 = sphi %s3580_s21, %s4312_s21   ;;  %s3535_s20 = sphi %s3578_s20, %s4311_s20   ;;  %s3531_s19 = sphi %s3576_s19, %s4310_s19   ;;  %s3527_s18 = sphi %s3574_s18, %s4309_s18  }
   0x4   : > { %s3599_s24 = sadd.s32 1, %s3539_s21   ;;  %s135_s25 = sadd.s32 1, %s3535_s20 }
   0x5   : > { %s132_s26 = ssub.s32 %s3539_s21, %s3599_s24  ;;  %p145_p0 = scmp.ne.s32.totalorder %s3535_s20, %s3531_s19 }
   0x6   : > { %p133_p1 = scmp.eq.s32.totalorder %s132_s26, 0  ;;  %p146_p2 = scmp.eq.s32.totalorder %s3595_s22, 1 }
   0x7   : > { %p151_p3 = scmp.ne.s32.totalorder %s3531_s19, %s3527_s18  ;;  %p152_p4 = scmp.eq.s32.totalorder %s2297_s23, 1 }
   0x8   : > { %s3610_s27 = scalar_select %p133_p1, %s3535_s20, %s135_s25  }
   0x9   : > { %p3612_p5 = por %p146_p2, %p145_p0  ;;  %p3616_p6 = por %p152_p4, %p151_p3 }
   0xa   : > { %p2300_p7 = scmp.ge.s32.totalorder %s3539_s21, 1  ;;  %p190_p8 = scmp.lt.s32.totalorder %s3539_s21, 3 }
   0xc   : > { %p191_p9 = pnand %p2300_p7, %p190_p8 }
   0xd   : > { %v3334_v0 = vld [vmem:[%s4302_s1 + $0x24] sm:$0xff] (!%p191_p9)   ;;  %v3541_v1 = vmov (!%p191_p9), 0.0   ;;  %v3335_v2 = vld [vmem:[%s4302_s1 + $0x2c] sm:$0xff] (!%p191_p9)   ;;  %vm3542_vm0 = vmmov (!%p191_p9), 0   ;;  %p217_p10 = scmp.lt.s32.totalorder (!%p191_p9), %s3595_s22, 1  ;;  %v3336_v3 = vld [vmem:[%s4302_s1 + $0x34] sm:$0xff] (!%p191_p9)  }
   0xe   : > { %194 = sbr.rel (%p191_p9) target bundleno = 786 (0x312), region = 40  ;;  %2872 = vmatprep.subr.bf16.mxu0 (!%p191_p9), %v3541_v1  ;;  %3054 = vmatprep.subr.bf16.mxu1 (!%p191_p9), %v3541_v1  ;;  %v3337_v4 = vld [vmem:[%s4302_s1 + $0x3c] sm:$0xff] (!%p191_p9)   ;;  %v3338_v5 = vld [vmem:[%s4302_s1 + $0x44] ss:$0 sps:$4 sm:$0xff] (!%p191_p9)   ;;  %vm279_vm1 = vcmask (!%p191_p9), 1043456   ;;  %vm275_vm2 = vcmask (!%p191_p9), 588800  }
   0xf   : > { %2873 = vmatpush3.bf16.msra.mxu0 (!%p191_p9), %v3334_v0  ;;  %2882 = vmatprep.mubr.msk.bf16.mxu0 (!%p191_p9), %vm3542_vm0, %v3541_v1  ;;  %v3343_v6 = vld [vmem:[%s4302_s1 + $0x20] ss:$0 sps:$4 sm:$0xff] (!%p191_p9)   ;;  %v281_v9 = vsel (!%p191_p9), %vm279_vm1, %v3338_v5, 0  ;;  %v3348_v10 = vld [vmem:[%s4302_s1 + $0x68] ss:$0 sps:$4 sm:$0xff] (!%p191_p9)   ;;  %v3341_v16 = vld [vmem:[%s4302_s1 + $0x10] sm:$0xff] (!%p191_p9)  }
  0x10   : > { %2874 = vmatprep.subr.bf16.mxu0 (!%p191_p9), %v3541_v1  ;;  %3070 = vmatprep.mubr.msk.bf16.mxu1 (!%p191_p9), %vm3542_vm0, %v3541_v1  ;;  %v3339_v11 = vld [vmem:[%s4302_s1] sm:$0xff] (!%p191_p9)   ;;  %v355_v13 = vsel (!%p191_p9), %vm279_vm1, %v3343_v6, 0  ;;  %v442_v14 = vsel (!%p191_p9), %vm279_vm1, %v3348_v10, 0  ;;  %v3340_v15 = vld [vmem:[%s4302_s1 + $0x8] sm:$0xff] (!%p191_p9)   ;;  %v3342_v17 = vld [vmem:[%s4302_s1 + $0x18] sm:$0xff] (!%p191_p9)   ;;  %s215_s11 = sand.u32 (!%p191_p9), 1, %s3531_s19  }
  0x11   : > { %v3344_v20 = vld [vmem:[%s4302_s1 + $0x48] sm:$0xff] (!%p191_p9)   ;;  %v3345_v22 = vld [vmem:[%s4302_s1 + $0x50] sm:$0xff] (!%p191_p9)   ;;  %v3346_v23 = vld [vmem:[%s4302_s1 + $0x58] sm:$0xff] (!%p191_p9)   ;;  %s2707_s13 = sshll.u32 (!%p191_p9), %s3595_s22, 4  ;;  %s216_s14 = scalar_lea.vmem (!%p191_p9), [#allocation3], %s215_s11 }
  0x12   : > { %v3347_v24 = vld [vmem:[%s4302_s1 + $0x60] sm:$0xff] (!%p191_p9)   ;;  %v3351_v30 = vld [vmem:[%s4304_s3 + $0x8] sm:$0xff] (!%p191_p9)   ;;  %v3353_v32 = vld [vmem:[%s4304_s3 + $0x10] sm:$0xff] (!%p191_p9)   ;;  %s2242_s15 = sshll.u32 (!%p191_p9), %s216_s14, 4  ;;  %s4259_s25 = scalar_lea.hbm (!%p191_p9), %s4306_s5, %s2707_s13  ;;  %s4261_s15 = int_to_ptr.vmem [resolvable:$true] %s2242_s15 }
  0x13   : > { %2875 = vmatpush3.bf16.msra.mxu0 (!%p191_p9), %v3335_v2  ;;  %v3349_v28 = vld [vmem:[%s4304_s3] sm:$0xff] (!%p191_p9)   ;;  %v3352_v31 = vld [vmem:[%s4304_s3 + $0x1c8] sm:$0xff] (!%p191_p9)   ;;  %v3354_v33 = vld [vmem:[%s4304_s3 + $0x1d0] sm:$0xff] (!%p191_p9)   ;;  %s3477_s26 = scalar_lea.vmem (!%p191_p9), %s4261_s15, 16  ;;  %s3543_s30 = smov (!%p191_p9), [#allocation3]  }
  0x14   : > { %2876 = vmatprep.subr.bf16.mxu0 (!%p191_p9), %v3541_v1  ;;  %v3350_v29 = vld [vmem:[%s4304_s3 + $0x1c0] sm:$0xff] (!%p191_p9)   ;;  %v3355_v34 = vld [vmem:[%s4304_s3 + $0x18] sm:$0xff] (!%p191_p9)   ;;  %v3359_v38 = vld [vmem:[%s4304_s3 + $0x28] sm:$0xff] (!%p191_p9)   ;;  %p3478_p11 = scmp.ne.s32.totalorder (!%p191_p9), %s4261_s15, %s3477_s26  ;;  %s3481_s6 = sshll.u32 (!%p191_p9), %s3543_s30, 4  ;;  %s3482_s6 = int_to_ptr.vmem [resolvable:$false] %s3481_s6 }
  0x15   : > { %s218_s9 = scalar_select %p217_p10, %s3595_s22, 1  ;;  %3055 = vmatpush3.bf16.msra.mxu1 %v3350_v29  ;;  %v3356_v35 = vld [vmem:[%s4304_s3 + $0x1d8] sm:$0xff]   ;;  %v3357_v36 = vld [vmem:[%s4304_s3 + $0x20] sm:$0xff]   ;;  %v3360_v39 = vld [vmem:[%s4304_s3 + $0x1e8] sm:$0xff]  }
  0x16   : > { %3056 = vmatprep.subr.bf16.mxu1 %v3541_v1  ;;  %v3358_v37 = vld [vmem:[%s4304_s3 + $0x1e0] sm:$0xff]   ;;  %v3361_v40 = vld [vmem:[%s4304_s3 + $0x30] sm:$0xff]   ;;  %v3363_v42 = vld [vmem:[%s4304_s3 + $0x38] sm:$0xff]   ;;  %s2230_s22 = scalar_lea.sflag [#allocation4], %s215_s11  ;;  %p3479_p12 = pnand %p3478_p11, %p3612_p5 }
  0x17   : > { %s3292_s12 = smul.u32 24, %s218_s9  ;;  %2877 = vmatpush3.bf16.msra.mxu0 %v3336_v3  ;;  %v3362_v41 = vld [vmem:[%s4304_s3 + $0x1f0] sm:$0xff]   ;;  %v3364_v43 = vld [vmem:[%s4304_s3 + $0x1f8] sm:$0xff]   ;;  %v2338_v55 = vld [vmem:[%s4303_s2] ss:$0 sm:$0xff]  ;;  %s3483_s7 = scalar_lea.vmem %s3482_s6, 32 }
  0x18   : > { %2878 = vmatprep.subr.bf16.mxu0 %v3541_v1  ;;  %v3365_v2 = vld [vmem:[%s4304_s3 + $0x40] sm:$0xff]   ;;  %v3369_v10 = vld [vmem:[%s4304_s3 + $0x50] sm:$0xff]   ;;  %v3384_v29 = vld [vmem:[%s4304_s3 + $0x248] sm:$0xff]   ;;  %p3480_p13 = pneg %p3479_p12  ;;  %p3484_p0 = scmp.lt.s32.totalorder %s4261_s15, %s3482_s6 }
  0x19   : > { %s3647_s17 = scalar_lea.vmem %s4301_s0, %s3292_s12  ;;  %3057 = vmatpush3.bf16.msra.mxu1 %v3352_v31  ;;  %v3366_v5 = vld [vmem:[%s4304_s3 + $0x200] sm:$0xff]   ;;  %v3386_v31 = vld [vmem:[%s4304_s3 + $0x250] sm:$0xff]   ;;  %p3485_p1 = scmp.lt.s32.totalorder %s3483_s7, %s3477_s26 }
  0x1a   : > { %v235_v7 = vld [vmem:[%s3647_s17 + $0x1] sm:$0xff]  ;;  %v236_v8 = vld [vmem:[%s3647_s17 + $0x9] sm:$0xff]  ;;  %3058 = vmatprep.subr.bf16.mxu1 %v3541_v1 }
  0x1b   : > { %2879 = vmatpush3.bf16.msra.mxu0 %v3337_v4  ;;  %v237_v12 = vpack.c.bf16 %v236_v8, %v235_v7  ;;  %v223_v18 = vld [vmem:[%s3647_s17] sm:$0xff]  ;;  %v224_v19 = vld [vmem:[%s3647_s17 + $0x8] sm:$0xff]  ;;  %p3486_p2 = por %p3485_p1, %p3484_p0 }
  0x1c   : > { %2880 = vmatprep.subr.bf16.mxu0 %v3541_v1  ;;  %v225_v21 = vpack.c.bf16 %v224_v19, %v223_v18  ;;  %v398_v25 = vld [vmem:[%s3647_s17 + $0x2] sm:$0xff]  ;;  %v399_v26 = vld [vmem:[%s3647_s17 + $0xa] sm:$0xff] }
  0x1d   : > { %v400_v27 = vpack.c.bf16 %v399_v26, %v398_v25  ;;  %3059 = vmatpush3.bf16.msra.mxu1 %v3354_v33  ;;  %v3367_v8 = vld [vmem:[%s4304_s3 + $0x48] sm:$0xff]   ;;  %v3377_v18 = vld [vmem:[%s4304_s3 + $0x70] sm:$0xff]   ;;  %v3382_v25 = vld [vmem:[%s4304_s3 + $0x240] sm:$0xff]   ;;  %p3487_p3 = pnand %p3486_p2, %p3480_p13 }
  0x1e   : > { %3060 = vmatprep.subr.bf16.mxu1 %v3541_v1  ;;  %v3378_v19 = vld [vmem:[%s4304_s3 + $0x230] sm:$0xff]   ;;  %v3388_v33 = vld [vmem:[%s4304_s3 + $0x258] sm:$0xff]  }
  0x1f   : > { %2881 = vmatpush3.bf16.msra.mxu0 %v281_v9  ;;  %v3368_v9 = vld [vmem:[%s4304_s3 + $0x208] sm:$0xff]  }
  0x20   : > { %2886 = vmatprep.subr.bf16.mxu0 %v3541_v1 }
  0x21   : > { %3061 = vmatpush3.bf16.msra.mxu1 %v3356_v35  ;;  %v3390_v35 = vld [vmem:[%s4304_s3 + $0x260] sm:$0xff]  }
  0x22   : > { %2883 = vmatmul.mubr.msk.bf16.vlgmr.msra.gmra.mrb[0].mxu0 %vm275_vm2, %v237_v12  ;;  %3062 = vmatprep.subr.bf16.mxu1 %v3541_v1  ;;  %v3371_v12 = vld [vmem:[%s4304_s3 + $0x58] sm:$0xff]  }
  0x23   : > { %2887 = vmatpush3.bf16.msra.mxu0 %v3339_v11  ;;  %2896 = vmatprep.mubr.msk.bf16.mxu0 %vm3542_vm0, %v3541_v1  ;;  %v3370_v11 = vld [vmem:[%s4304_s3 + $0x210] sm:$0xff]  }
  0x24   : > { %2888 = vmatprep.subr.bf16.mxu0 %v3541_v1 }
  0x25   : > { %3063 = vmatpush3.bf16.msra.mxu1 %v3358_v37  ;;  %v3392_v37 = vld [vmem:[%s4304_s3 + $0x268] sm:$0xff]  }
  0x26   : > { %3064 = vmatprep.subr.bf16.mxu1 %v3541_v1 }
  0x27   : > { %2889 = vmatpush3.bf16.msra.mxu0 %v3340_v15  ;;  %v3374_v15 = vld [vmem:[%s4304_s3 + $0x220] sm:$0xff]  }
  0x28   : > { %2890 = vmatprep.subr.bf16.mxu0 %v3541_v1 }
  0x29   : > { %3065 = vmatpush3.bf16.msra.mxu1 %v3360_v39  ;;  %v3394_v39 = vld [vmem:[%s4304_s3 + $0x270] sm:$0xff]  }
  0x2a   : > { %3066 = vmatprep.subr.bf16.mxu1 %v3541_v1 }
  0x2b   : > { %2891 = vmatpush3.bf16.msra.mxu0 %v3341_v16  ;;  %v3375_v16 = vld [vmem:[%s4304_s3 + $0x68] sm:$0xff]  }
  0x2c   : > { %2892 = vmatprep.subr.bf16.mxu0 %v3541_v1 }
  0x2d   : > { %3067 = vmatpush3.bf16.msra.mxu1 %v3362_v41  ;;  %v3396_v41 = vld [vmem:[%s4304_s3 + $0x278] sm:$0xff]  }
  0x2e   : > { %3068 = vmatprep.subr.bf16.mxu1 %v3541_v1 }
  0x2f   : > { %2893 = vmatpush3.bf16.msra.mxu0 %v3342_v17  ;;  %v3376_v17 = vld [vmem:[%s4304_s3 + $0x228] sm:$0xff]  }
  0x30   : > { %2894 = vmatprep.subr.bf16.mxu0 %v3541_v1 }
  0x31   : > { %3069 = vmatpush3.bf16.msra.mxu1 %v3364_v43 }
  0x32   : > { %3074 = vmatprep.subr.bf16.mxu1 %v3541_v1 }
  0x33   : > { %2895 = vmatpush3.bf16.msra.mxu0 %v355_v13  ;;  %v3372_v13 = vld [vmem:[%s4304_s3 + $0x218] sm:$0xff]  }
  0x34   : > { %2900 = vmatprep.subr.bf16.mxu0 %v3541_v1 }
  0x36   : > { %2897 = vmatmul.mubr.msk.bf16.vlgmr.msra.gmra.mrb[4].mxu0 %vm275_vm2, %v225_v21  ;;  %v3380_v21 = vld [vmem:[%s4304_s3 + $0x238] sm:$0xff]  }
  0x37   : > { %2901 = vmatpush3.bf16.msra.mxu0 %v3344_v20  ;;  %2910 = vmatprep.mubr.msk.bf16.mxu0 %vm3542_vm0, %v3541_v1  ;;  %v3379_v20 = vld [vmem:[%s4304_s3 + $0x78] sm:$0xff]  }
  0x38   : > { %2902 = vmatprep.subr.bf16.mxu0 %v3541_v1 }
  0x3b   : > { %2903 = vmatpush3.bf16.msra.mxu0 %v3345_v22 }
  0x3c   : > { %2904 = vmatprep.subr.bf16.mxu0 %v3541_v1 }
  0x3f   : > { %2905 = vmatpush3.bf16.msra.mxu0 %v3346_v23 }
  0x40   : > { %2906 = vmatprep.subr.bf16.mxu0 %v3541_v1 }
  0x43   : > { %2907 = vmatpush3.bf16.msra.mxu0 %v3347_v24  ;;  %v3381_v24 = vld [vmem:[%s4304_s3 + $0x80] sm:$0xff]  }
  0x44   : > { %2908 = vmatprep.subr.bf16.mxu0 %v3541_v1 }
  0x47   : > { %2909 = vmatpush3.bf16.msra.mxu0 %v442_v14  ;;  %v3373_v14 = vld [vmem:[%s4304_s3 + $0x60] sm:$0xff]  }
  0x48   : > { %2914 = vmatprep.subr.bf16.mxu0 %v3541_v1 }
  0x4a   : > { %2911 = vmatmul.mubr.msk.bf16.vlgmr.msra.gmra.mrb[8].mxu0 %vm275_vm2, %v400_v27 }
  0x4b   : > { %2930 = vmatprep.mubr.msk.bf16.mxu0 %vm3542_vm0, %v3541_v1  ;;  %2915 = vmatpush3.bf16.msra.mxu0 %v3349_v28  ;;  %v3383_v28 = vld [vmem:[%s4304_s3 + $0x88] sm:$0xff]  }
  0x4c   : > { %2916 = vmatprep.subr.bf16.mxu0 %v3541_v1 }
  0x4f   : > { %2917 = vmatpush3.bf16.msra.mxu0 %v3351_v30  ;;  %v3385_v30 = vld [vmem:[%s4304_s3 + $0x90] sm:$0xff]  }
  0x50   : > { %2918 = vmatprep.subr.bf16.mxu0 %v3541_v1 }
  0x53   : > { %2919 = vmatpush3.bf16.msra.mxu0 %v3353_v32  ;;  %v3387_v32 = vld [vmem:[%s4304_s3 + $0x98] sm:$0xff]  }
  0x54   : > { %2920 = vmatprep.subr.bf16.mxu0 %v3541_v1 }
  0x57   : > { %2921 = vmatpush3.bf16.msra.mxu0 %v3355_v34  ;;  %v3389_v34 = vld [vmem:[%s4304_s3 + $0xa0] sm:$0xff]  }
  0x58   : > { %2922 = vmatprep.subr.bf16.mxu0 %v3541_v1 }
  0x5b   : > { %2923 = vmatpush3.bf16.msra.mxu0 %v3357_v36  ;;  %v3391_v36 = vld [vmem:[%s4304_s3 + $0xa8] sm:$0xff]  }
  0x5c   : > { %2924 = vmatprep.subr.bf16.mxu0 %v3541_v1 }
  0x5f   : > { %2925 = vmatpush3.bf16.msra.mxu0 %v3359_v38  ;;  %v3393_v38 = vld [vmem:[%s4304_s3 + $0xb0] sm:$0xff]  }
  0x60   : > { %2926 = vmatprep.subr.bf16.mxu0 %v3541_v1 }
  0x63   : > { %2927 = vmatpush3.bf16.msra.mxu0 %v3361_v40  ;;  %v3395_v40 = vld [vmem:[%s4304_s3 + $0xb8] sm:$0xff]  }
  0x64   : > { %2928 = vmatprep.subr.bf16.mxu0 %v3541_v1 }
  0x67   : > { %2929 = vmatpush3.bf16.msra.mxu0 %v3363_v42 }
  0x68   : > { %2934 = vmatprep.subr.bf16.mxu0 %v3541_v1 }
  0xf5   : > { %v317_v44 = vpop.f32.mrb[0].mxu0 }
  0xf6   : > { %v2884_v45 = vpop.f32.mrb[1].mxu0 }
  0xf7   : > { %v320_v46 = vpop.f32.mrb[2].mxu0  ;;  %v3398_v45 = vld [vmem:[%s4304_s3 + $0x280] sm:$0xff]  }
  0xf8   : > { %v2885_v47 = vpop.f32.mrb[3].mxu0 }
 0x109   : > { %v391_v48 = vpop.f32.mrb[4].mxu0 }
 0x10a   : > { %v392_v49 = vadd.f32 %v391_v48, %v317_v44  ;;  %v2898_v50 = vpop.f32.mrb[5].mxu0  ;;  %v3397_v44 = vld [vmem:[%s4304_s3 + $0xc0] sm:$0xff]   ;;  %v3399_v48 = vld [vmem:[%s4304_s3 + $0xc8] sm:$0xff]  }
 0x10b   : > { %v394_v51 = vpop.f32.mrb[6].mxu0  ;;  %v3401_v50 = vld [vmem:[%s4304_s3 + $0xd0] sm:$0xff]  }
 0x10c   : > { %v395_v52 = vadd.f32 %v394_v51, %v320_v46  ;;  %v2899_v53 = vpop.f32.mrb[7].mxu0  ;;  %v3402_v51 = vld [vmem:[%s4304_s3 + $0x290] sm:$0xff]  }
 0x10d   : > { %v3404_v53 = vld [vmem:[%s4304_s3 + $0x298] sm:$0xff]  }
 0x11d   : > { %v478_v54 = vpop.f32.mrb[8].mxu0 }
 0x11e   : > { %v485_v56 = vadd.f32 %v478_v54, %v392_v49  ;;  %v2912_v57 = vpop.f32.mrb[9].mxu0  ;;  %v3400_v49 = vld [vmem:[%s4304_s3 + $0x288] sm:$0xff]   ;;  %v3405_v54 = vld [vmem:[%s4304_s3 + $0xe0] sm:$0xff]  }
 0x11f   : > { %v481_v58 = vpop.f32.mrb[10].mxu0  ;;  %v3408_v57 = vld [vmem:[%s4304_s3 + $0x2a8] sm:$0xff]  }
 0x120   : > { %v494_v59 = vadd.f32 %v2338_v55, %v485_v56  ;;  %v486_v60 = vadd.f32 %v481_v58, %v395_v52  ;;  %v2913_v61 = vpop.f32.mrb[11].mxu0  ;;  %v3403_v52 = vld [vmem:[%s4304_s3 + $0xd8] sm:$0xff]   ;;  %v3407_v56 = vld [vmem:[%s4304_s3 + $0xe8] sm:$0xff]   ;;  %v3409_v58 = vld [vmem:[%s4304_s3 + $0xf0] sm:$0xff]  }
 0x121   : > { %v3412_v61 = vld [vmem:[%s4304_s3 + $0x2b8] sm:$0xff]  }
 0x122   : > { %v496_v62 = vmax.f32 %v494_v59, 0.0  ;;  %v495_v63 = vadd.f32 %v2338_v55, %v486_v60  ;;  %v3406_v55 = vld [vmem:[%s4304_s3 + $0x2a0] sm:$0xff]   ;;  %v3410_v59 = vld [vmem:[%s4304_s3 + $0x2b0] sm:$0xff]   ;;  %v3411_v60 = vld [vmem:[%s4304_s3 + $0xf8] sm:$0xff]  }
 0x124   : > { %498 = vst [vmem:[#allocation2] sm:$0xff] %v496_v62  ;;  %v497_v0 = vmax.f32 %v495_v63, 0.0 }
 0x126   : > { %499 = vst [vmem:[#allocation2 + $0x8] sm:$0xff] %v497_v0  ;;  %v3413_v0 = vld [vmem:[%s4304_s3 + $0x100] sm:$0xff]  }
 0x12b   : > { %v501_v3 = vld [vmem:[#allocation2] sm:$0x1]  ;;  %v1256_v4 = vld [vmem:[#allocation2 + $0x7] sm:$0x1]  ;;  %v608_v22 = vld [vmem:[#allocation2 + $0x1] sm:$0x1] }
 0x12c   : > { %v502_v6 = vpack.c.bf16 %v501_v3, %v501_v3  ;;  %v1257_v7 = vpack.c.bf16 %v1256_v4, %v1256_v4  ;;  %v609_v26 = vpack.c.bf16 %v608_v22, %v608_v22  ;;  %v716_v42 = vld [vmem:[#allocation2 + $0x2] sm:$0x1]  ;;  %v824_v62 = vld [vmem:[#allocation2 + $0x3] sm:$0x1] }
 0x12d   : > { %v1364_v23 = vld [vmem:[#allocation2 + $0x8] sm:$0x1]  ;;  %v1472_v43 = vld [vmem:[#allocation2 + $0x9] sm:$0x1]  ;;  %v717_v46 = vpack.c.bf16 %v716_v42, %v716_v42  ;;  %v1580_v63 = vld [vmem:[#allocation2 + $0xa] sm:$0x1]  ;;  %v825_v3 = vpack.c.bf16 %v824_v62, %v824_v62 }
 0x12e   : > { %2931 = vmatmul.mubr.bf16.vlgmr.msra.gmra.mrb[12].mxu0 %v502_v6  ;;  %3071 = vmatmul.mubr.bf16.vlgmr.msra.gmra.mrb[0].mxu1 %v1257_v7  ;;  %v1365_v27 = vpack.c.bf16 %v1364_v23, %v1364_v23  ;;  %v1473_v47 = vpack.c.bf16 %v1472_v43, %v1472_v43  ;;  %v1581_v4 = vpack.c.bf16 %v1580_v63, %v1580_v63  ;;  %v3416_v6 = vld [vmem:[%s4304_s3 + $0x2c8] sm:$0xff]   ;;  %v3417_v7 = vld [vmem:[%s4304_s3 + $0x110] sm:$0xff]   ;;  %v3430_v22 = vld [vmem:[%s4304_s3 + $0x300] sm:$0xff]  }
 0x12f   : > { %2935 = vmatpush3.bf16.msra.mxu0 %v3365_v2  ;;  %3075 = vmatpush3.bf16.msra.mxu1 %v3366_v5  ;;  %v3414_v2 = vld [vmem:[%s4304_s3 + $0x2c0] sm:$0xff]   ;;  %v3415_v5 = vld [vmem:[%s4304_s3 + $0x108] sm:$0xff]  }
 0x130   : > { %2936 = vmatprep.subr.bf16.mxu0 %v3541_v1  ;;  %3076 = vmatprep.subr.bf16.mxu1 %v3541_v1  ;;  %v3446_v42 = vld [vmem:[%s4304_s3 + $0x340] sm:$0xff]  }
 0x131   : > { %2950 = vmatprep.mubr.msk.bf16.mxu0 %vm3542_vm0, %v3541_v1  ;;  %3090 = vmatprep.mubr.msk.bf16.mxu1 %vm3542_vm0, %v3541_v1 }
 0x133   : > { %2937 = vmatpush3.bf16.msra.mxu0 %v3367_v8  ;;  %3077 = vmatpush3.bf16.msra.mxu1 %v3368_v9  ;;  %v3418_v8 = vld [vmem:[%s4304_s3 + $0x2d0] sm:$0xff]   ;;  %v3419_v9 = vld [vmem:[%s4304_s3 + $0x118] sm:$0xff]  }
 0x134   : > { %2938 = vmatprep.subr.bf16.mxu0 %v3541_v1  ;;  %3078 = vmatprep.subr.bf16.mxu1 %v3541_v1 }
 0x137   : > { %2939 = vmatpush3.bf16.msra.mxu0 %v3369_v10  ;;  %3079 = vmatpush3.bf16.msra.mxu1 %v3370_v11  ;;  %v3420_v10 = vld [vmem:[%s4304_s3 + $0x2d8] sm:$0xff]   ;;  %v3421_v11 = vld [vmem:[%s4304_s3 + $0x120] sm:$0xff]  }
 0x138   : > { %2940 = vmatprep.subr.bf16.mxu0 %v3541_v1  ;;  %3080 = vmatprep.subr.bf16.mxu1 %v3541_v1 }
 0x13b   : > { %2941 = vmatpush3.bf16.msra.mxu0 %v3371_v12  ;;  %3081 = vmatpush3.bf16.msra.mxu1 %v3372_v13  ;;  %v3422_v12 = vld [vmem:[%s4304_s3 + $0x2e0] sm:$0xff]   ;;  %v3423_v13 = vld [vmem:[%s4304_s3 + $0x128] sm:$0xff]  }
 0x13c   : > { %2942 = vmatprep.subr.bf16.mxu0 %v3541_v1  ;;  %3082 = vmatprep.subr.bf16.mxu1 %v3541_v1 }
 0x13f   : > { %2943 = vmatpush3.bf16.msra.mxu0 %v3373_v14  ;;  %3083 = vmatpush3.bf16.msra.mxu1 %v3374_v15  ;;  %v3424_v14 = vld [vmem:[%s4304_s3 + $0x2e8] sm:$0xff]   ;;  %v3425_v15 = vld [vmem:[%s4304_s3 + $0x130] sm:$0xff]  }
 0x140   : > { %2944 = vmatprep.subr.bf16.mxu0 %v3541_v1  ;;  %3084 = vmatprep.subr.bf16.mxu1 %v3541_v1 }
 0x143   : > { %2945 = vmatpush3.bf16.msra.mxu0 %v3375_v16  ;;  %3085 = vmatpush3.bf16.msra.mxu1 %v3376_v17  ;;  %v3426_v16 = vld [vmem:[%s4304_s3 + $0x2f0] sm:$0xff]   ;;  %v3427_v17 = vld [vmem:[%s4304_s3 + $0x138] sm:$0xff]  }
 0x144   : > { %2946 = vmatprep.subr.bf16.mxu0 %v3541_v1  ;;  %3086 = vmatprep.subr.bf16.mxu1 %v3541_v1 }
 0x147   : > { %2947 = vmatpush3.bf16.msra.mxu0 %v3377_v18  ;;  %3087 = vmatpush3.bf16.msra.mxu1 %v3378_v19  ;;  %v3428_v18 = vld [vmem:[%s4304_s3 + $0x2f8] sm:$0xff]   ;;  %v932_v19 = vld [vmem:[#allocation2 + $0x4] sm:$0x1] }
 0x148   : > { %2948 = vmatprep.subr.bf16.mxu0 %v3541_v1  ;;  %3088 = vmatprep.subr.bf16.mxu1 %v3541_v1  ;;  %v933_v23 = vpack.c.bf16 %v932_v19, %v932_v19 }
 0x14b   : > { %2949 = vmatpush3.bf16.msra.mxu0 %v3379_v20  ;;  %3089 = vmatpush3.bf16.msra.mxu1 %v3380_v21  ;;  %v1688_v20 = vld [vmem:[#allocation2 + $0xb] sm:$0x1]  ;;  %v3429_v21 = vld [vmem:[%s4304_s3 + $0x140] sm:$0xff]  }
 0x14c   : > { %2954 = vmatprep.subr.bf16.mxu0 %v3541_v1  ;;  %3094 = vmatprep.subr.bf16.mxu1 %v3541_v1 }
 0x14e   : > { %2951 = vmatmul.mubr.bf16.vlgmr.msra.gmra.mrb[12].mxu0 %v609_v26  ;;  %3091 = vmatmul.mubr.bf16.vlgmr.msra.gmra.mrb[0].mxu1 %v1365_v27  ;;  %v3432_v26 = vld [vmem:[%s4304_s3 + $0x308] sm:$0xff]   ;;  %v3433_v27 = vld [vmem:[%s4304_s3 + $0x150] sm:$0xff]  }
 0x14f   : > { %2955 = vmatpush3.bf16.msra.mxu0 %v3381_v24  ;;  %3095 = vmatpush3.bf16.msra.mxu1 %v3382_v25  ;;  %v1689_v24 = vpack.c.bf16 %v1688_v20, %v1688_v20  ;;  %v3431_v25 = vld [vmem:[%s4304_s3 + $0x148] sm:$0xff]  }
 0x150   : > { %2956 = vmatprep.subr.bf16.mxu0 %v3541_v1  ;;  %3096 = vmatprep.subr.bf16.mxu1 %v3541_v1 }
 0x151   : > { %2970 = vmatprep.mubr.msk.bf16.mxu0 %vm3542_vm0, %v3541_v1  ;;  %3110 = vmatprep.mubr.msk.bf16.mxu1 %vm3542_vm0, %v3541_v1 }
 0x153   : > { %2957 = vmatpush3.bf16.msra.mxu0 %v3383_v28  ;;  %3097 = vmatpush3.bf16.msra.mxu1 %v3384_v29  ;;  %v3434_v28 = vld [vmem:[%s4304_s3 + $0x310] sm:$0xff]   ;;  %v3435_v29 = vld [vmem:[%s4304_s3 + $0x158] sm:$0xff]  }
 0x154   : > { %2958 = vmatprep.subr.bf16.mxu0 %v3541_v1  ;;  %3098 = vmatprep.subr.bf16.mxu1 %v3541_v1 }
 0x157   : > { %2959 = vmatpush3.bf16.msra.mxu0 %v3385_v30  ;;  %3099 = vmatpush3.bf16.msra.mxu1 %v3386_v31  ;;  %v3436_v30 = vld [vmem:[%s4304_s3 + $0x318] sm:$0xff]   ;;  %v3437_v31 = vld [vmem:[%s4304_s3 + $0x160] sm:$0xff]  }
 0x158   : > { %2960 = vmatprep.subr.bf16.mxu0 %v3541_v1  ;;  %3100 = vmatprep.subr.bf16.mxu1 %v3541_v1 }
 0x15b   : > { %2961 = vmatpush3.bf16.msra.mxu0 %v3387_v32  ;;  %3101 = vmatpush3.bf16.msra.mxu1 %v3388_v33  ;;  %v3438_v32 = vld [vmem:[%s4304_s3 + $0x320] sm:$0xff]   ;;  %v3439_v33 = vld [vmem:[%s4304_s3 + $0x168] sm:$0xff]  }
 0x15c   : > { %2962 = vmatprep.subr.bf16.mxu0 %v3541_v1  ;;  %3102 = vmatprep.subr.bf16.mxu1 %v3541_v1 }
 0x15f   : > { %2963 = vmatpush3.bf16.msra.mxu0 %v3389_v34  ;;  %3103 = vmatpush3.bf16.msra.mxu1 %v3390_v35  ;;  %v3440_v34 = vld [vmem:[%s4304_s3 + $0x328] sm:$0xff]   ;;  %v3441_v35 = vld [vmem:[%s4304_s3 + $0x170] sm:$0xff]  }
 0x160   : > { %2964 = vmatprep.subr.bf16.mxu0 %v3541_v1  ;;  %3104 = vmatprep.subr.bf16.mxu1 %v3541_v1 }
 0x163   : > { %2965 = vmatpush3.bf16.msra.mxu0 %v3391_v36  ;;  %3105 = vmatpush3.bf16.msra.mxu1 %v3392_v37  ;;  %v3442_v36 = vld [vmem:[%s4304_s3 + $0x330] sm:$0xff]   ;;  %v3443_v37 = vld [vmem:[%s4304_s3 + $0x178] sm:$0xff]  }
 0x164   : > { %2966 = vmatprep.subr.bf16.mxu0 %v3541_v1  ;;  %3106 = vmatprep.subr.bf16.mxu1 %v3541_v1 }
 0x167   : > { %2967 = vmatpush3.bf16.msra.mxu0 %v3393_v38  ;;  %3107 = vmatpush3.bf16.msra.mxu1 %v3394_v39  ;;  %v3444_v38 = vld [vmem:[%s4304_s3 + $0x338] sm:$0xff]   ;;  %v1040_v39 = vld [vmem:[#allocation2 + $0x5] sm:$0x1] }
 0x168   : > { %2968 = vmatprep.subr.bf16.mxu0 %v3541_v1  ;;  %3108 = vmatprep.subr.bf16.mxu1 %v3541_v1  ;;  %v1041_v43 = vpack.c.bf16 %v1040_v39, %v1040_v39 }
 0x16b   : > { %2969 = vmatpush3.bf16.msra.mxu0 %v3395_v40  ;;  %3109 = vmatpush3.bf16.msra.mxu1 %v3396_v41  ;;  %v1796_v40 = vld [vmem:[#allocation2 + $0xc] sm:$0x1]  ;;  %v3445_v41 = vld [vmem:[%s4304_s3 + $0x180] sm:$0xff]  }
 0x16c   : > { %2974 = vmatprep.subr.bf16.mxu0 %v3541_v1  ;;  %3114 = vmatprep.subr.bf16.mxu1 %v3541_v1 }
 0x16e   : > { %2971 = vmatmul.mubr.bf16.vlgmr.msra.gmra.mrb[12].mxu0 %v717_v46  ;;  %3111 = vmatmul.mubr.bf16.vlgmr.msra.gmra.mrb[0].mxu1 %v1473_v47  ;;  %v3448_v46 = vld [vmem:[%s4304_s3 + $0x348] sm:$0xff]   ;;  %v3449_v47 = vld [vmem:[%s4304_s3 + $0x190] sm:$0xff]  }
 0x16f   : > { %2975 = vmatpush3.bf16.msra.mxu0 %v3397_v44  ;;  %3115 = vmatpush3.bf16.msra.mxu1 %v3398_v45  ;;  %v1797_v44 = vpack.c.bf16 %v1796_v40, %v1796_v40  ;;  %v3447_v45 = vld [vmem:[%s4304_s3 + $0x188] sm:$0xff]  }
 0x170   : > { %2976 = vmatprep.subr.bf16.mxu0 %v3541_v1  ;;  %3116 = vmatprep.subr.bf16.mxu1 %v3541_v1 }
 0x171   : > { %2990 = vmatprep.mubr.msk.bf16.mxu0 %vm3542_vm0, %v3541_v1  ;;  %3130 = vmatprep.mubr.msk.bf16.mxu1 %vm3542_vm0, %v3541_v1 }
 0x173   : > { %2977 = vmatpush3.bf16.msra.mxu0 %v3399_v48  ;;  %3117 = vmatpush3.bf16.msra.mxu1 %v3400_v49  ;;  %v3450_v48 = vld [vmem:[%s4304_s3 + $0x350] sm:$0xff]   ;;  %v3451_v49 = vld [vmem:[%s4304_s3 + $0x198] sm:$0xff]  }
 0x174   : > { %2978 = vmatprep.subr.bf16.mxu0 %v3541_v1  ;;  %3118 = vmatprep.subr.bf16.mxu1 %v3541_v1 }
 0x177   : > { %2979 = vmatpush3.bf16.msra.mxu0 %v3401_v50  ;;  %3119 = vmatpush3.bf16.msra.mxu1 %v3402_v51  ;;  %v3452_v50 = vld [vmem:[%s4304_s3 + $0x358] sm:$0xff]   ;;  %v3453_v51 = vld [vmem:[%s4304_s3 + $0x1a0] sm:$0xff]  }
 0x178   : > { %2980 = vmatprep.subr.bf16.mxu0 %v3541_v1  ;;  %3120 = vmatprep.subr.bf16.mxu1 %v3541_v1 }
 0x17b   : > { %2981 = vmatpush3.bf16.msra.mxu0 %v3403_v52  ;;  %3121 = vmatpush3.bf16.msra.mxu1 %v3404_v53  ;;  %v3454_v52 = vld [vmem:[%s4304_s3 + $0x360] sm:$0xff]   ;;  %v3455_v53 = vld [vmem:[%s4304_s3 + $0x1a8] sm:$0xff]  }
 0x17c   : > { %2982 = vmatprep.subr.bf16.mxu0 %v3541_v1  ;;  %3122 = vmatprep.subr.bf16.mxu1 %v3541_v1 }
 0x17f   : > { %2983 = vmatpush3.bf16.msra.mxu0 %v3405_v54  ;;  %3123 = vmatpush3.bf16.msra.mxu1 %v3406_v55  ;;  %v3456_v54 = vld [vmem:[%s4304_s3 + $0x368] sm:$0xff]   ;;  %v3457_v55 = vld [vmem:[%s4304_s3 + $0x1b0] sm:$0xff]  }
 0x180   : > { %2984 = vmatprep.subr.bf16.mxu0 %v3541_v1  ;;  %3124 = vmatprep.subr.bf16.mxu1 %v3541_v1 }
 0x183   : > { %2985 = vmatpush3.bf16.msra.mxu0 %v3407_v56  ;;  %3125 = vmatpush3.bf16.msra.mxu1 %v3408_v57  ;;  %v3458_v56 = vld [vmem:[%s4304_s3 + $0x370] sm:$0xff]   ;;  %v3459_v57 = vld [vmem:[%s4304_s3 + $0x1b8] sm:$0xff]  }
 0x184   : > { %2986 = vmatprep.subr.bf16.mxu0 %v3541_v1  ;;  %3126 = vmatprep.subr.bf16.mxu1 %v3541_v1 }
 0x187   : > { %2987 = vmatpush3.bf16.msra.mxu0 %v3409_v58  ;;  %3127 = vmatpush3.bf16.msra.mxu1 %v3410_v59  ;;  %v3460_v58 = vld [vmem:[%s4304_s3 + $0x378] sm:$0xff]   ;;  %v1148_v59 = vld [vmem:[#allocation2 + $0x6] sm:$0x1] }
 0x188   : > { %2988 = vmatprep.subr.bf16.mxu0 %v3541_v1  ;;  %3128 = vmatprep.subr.bf16.mxu1 %v3541_v1  ;;  %v1149_v62 = vpack.c.bf16 %v1148_v59, %v1148_v59 }
 0x18b   : > { %2989 = vmatpush3.bf16.msra.mxu0 %v3411_v60  ;;  %3129 = vmatpush3.bf16.msra.mxu1 %v3412_v61  ;;  %v1904_v60 = vld [vmem:[#allocation2 + $0xd] sm:$0x1]  ;;  %v3461_v61 = vld [vmem:[%s4304_s3 + $0x380] sm:$0xff]  }
 0x18c   : > { %2994 = vmatprep.subr.bf16.mxu0 %v3541_v1  ;;  %3134 = vmatprep.subr.bf16.mxu1 %v3541_v1  ;;  %v1905_v63 = vpack.c.bf16 %v1904_v60, %v1904_v60 }
 0x18e   : > { %2991 = vmatmul.mubr.bf16.vlgmr.msra.gmra.mrb[12].mxu0 %v825_v3  ;;  %3131 = vmatmul.mubr.bf16.vlgmr.msra.gmra.mrb[0].mxu1 %v1581_v4  ;;  %v3464_v3 = vld [vmem:[%s4304_s3 + $0x398] sm:$0xff]   ;;  %v3465_v4 = vld [vmem:[%s4304_s3 + $0x3a0] sm:$0xff]  }
 0x18f   : > { %2995 = vmatpush3.bf16.msra.mxu0 %v3413_v0  ;;  %3135 = vmatpush3.bf16.msra.mxu1 %v3414_v2  ;;  %v3462_v0 = vld [vmem:[%s4304_s3 + $0x388] sm:$0xff]   ;;  %v3463_v2 = vld [vmem:[%s4304_s3 + $0x390] sm:$0xff]  }
 0x190   : > { %2996 = vmatprep.subr.bf16.mxu0 %v3541_v1  ;;  %3136 = vmatprep.subr.bf16.mxu1 %v3541_v1 }
 0x191   : > { %3010 = vmatprep.mubr.msk.bf16.mxu0 %vm3542_vm0, %v3541_v1  ;;  %3150 = vmatprep.mubr.msk.bf16.mxu1 %vm3542_vm0, %v3541_v1 }
 0x193   : > { %2997 = vmatpush3.bf16.msra.mxu0 %v3415_v5  ;;  %3137 = vmatpush3.bf16.msra.mxu1 %v3416_v6  ;;  %v3466_v5 = vld [vmem:[%s4304_s3 + $0x3a8] sm:$0xff]   ;;  %v3467_v6 = vld [vmem:[%s4304_s3 + $0x3b0] sm:$0xff]  }
 0x194   : > { %2998 = vmatprep.subr.bf16.mxu0 %v3541_v1  ;;  %3138 = vmatprep.subr.bf16.mxu1 %v3541_v1 }
 0x197   : > { %2999 = vmatpush3.bf16.msra.mxu0 %v3417_v7  ;;  %3139 = vmatpush3.bf16.msra.mxu1 %v3418_v8  ;;  %v3468_v7 = vld [vmem:[%s4304_s3 + $0x3b8] sm:$0xff]   ;;  %v2012_v8 = vld [vmem:[#allocation2 + $0xe] sm:$0x1] }
 0x198   : > { %3000 = vmatprep.subr.bf16.mxu0 %v3541_v1  ;;  %3140 = vmatprep.subr.bf16.mxu1 %v3541_v1 }
 0x19b   : > { %3001 = vmatpush3.bf16.msra.mxu0 %v3419_v9  ;;  %3141 = vmatpush3.bf16.msra.mxu1 %v3420_v10  ;;  %v3469_v9 = vld [vmem:[%s4304_s3 + $0x3c0] sm:$0xff]   ;;  %v2013_v10 = vpack.c.bf16 %v2012_v8, %v2012_v8 }
 0x19c   : > { %3002 = vmatprep.subr.bf16.mxu0 %v3541_v1  ;;  %3142 = vmatprep.subr.bf16.mxu1 %v3541_v1 }
 0x19f   : > { %3003 = vmatpush3.bf16.msra.mxu0 %v3421_v11  ;;  %3143 = vmatpush3.bf16.msra.mxu1 %v3422_v12  ;;  %v3470_v11 = vld [vmem:[%s4304_s3 + $0x3c8] sm:$0xff]   ;;  %v3471_v12 = vld [vmem:[%s4304_s3 + $0x3d0] sm:$0xff]  }
 0x1a0   : > { %3004 = vmatprep.subr.bf16.mxu0 %v3541_v1  ;;  %3144 = vmatprep.subr.bf16.mxu1 %v3541_v1 }
 0x1a3   : > { %3005 = vmatpush3.bf16.msra.mxu0 %v3423_v13  ;;  %3145 = vmatpush3.bf16.msra.mxu1 %v3424_v14  ;;  %v3472_v13 = vld [vmem:[%s4304_s3 + $0x3d8] sm:$0xff]   ;;  %v3473_v14 = vld [vmem:[%s4304_s3 + $0x3e0] sm:$0xff]  }
 0x1a4   : > { %3006 = vmatprep.subr.bf16.mxu0 %v3541_v1  ;;  %3146 = vmatprep.subr.bf16.mxu1 %v3541_v1 }
 0x1a7   : > { %3007 = vmatpush3.bf16.msra.mxu0 %v3425_v15  ;;  %3147 = vmatpush3.bf16.msra.mxu1 %v3426_v16  ;;  %v3474_v15 = vld [vmem:[%s4304_s3 + $0x3e8] sm:$0xff]   ;;  %v3475_v16 = vld [vmem:[%s4304_s3 + $0x3f0] sm:$0xff]  }
 0x1a8   : > { %3008 = vmatprep.subr.bf16.mxu0 %v3541_v1  ;;  %3148 = vmatprep.subr.bf16.mxu1 %v3541_v1 }
 0x1ab   : > { %3009 = vmatpush3.bf16.msra.mxu0 %v3427_v17  ;;  %3149 = vmatpush3.bf16.msra.mxu1 %v3428_v18  ;;  %v3476_v17 = vld [vmem:[%s4304_s3 + $0x3f8] sm:$0xff]   ;;  %v2120_v18 = vld [vmem:[#allocation2 + $0xf] sm:$0x1] }
 0x1ac   : > { %3014 = vmatprep.subr.bf16.mxu0 %v3541_v1  ;;  %3154 = vmatprep.subr.bf16.mxu1 %v3541_v1  ;;  %v2121_v19 = vpack.c.bf16 %v2120_v18, %v2120_v18 }
 0x1ae   : > { %3011 = vmatmul.mubr.bf16.vlgmr.msra.gmra.mrb[12].mxu0 %v933_v23  ;;  %3151 = vmatmul.mubr.bf16.vlgmr.msra.gmra.mrb[0].mxu1 %v1689_v24  ;;  %v500_v24 = vld [vmem:[%s4305_s4] sm:$0x1] }
 0x1af   : > { %3015 = vmatpush3.bf16.msra.mxu0 %v3429_v21  ;;  %3155 = vmatpush3.bf16.msra.mxu1 %v3430_v22 }
 0x1b0   : > { %3016 = vmatprep.subr.bf16.mxu0 %v3541_v1  ;;  %3156 = vmatprep.subr.bf16.mxu1 %v3541_v1 }
 0x1b1   : > { %3030 = vmatprep.mubr.msk.bf16.mxu0 %vm3542_vm0, %v3541_v1  ;;  %3170 = vmatprep.mubr.msk.bf16.mxu1 %vm3542_vm0, %v3541_v1 }
 0x1b3   : > { %3017 = vmatpush3.bf16.msra.mxu0 %v3431_v25  ;;  %3157 = vmatpush3.bf16.msra.mxu1 %v3432_v26 }
 0x1b4   : > { %3018 = vmatprep.subr.bf16.mxu0 %v3541_v1  ;;  %3158 = vmatprep.subr.bf16.mxu1 %v3541_v1 }
 0x1b7   : > { %3019 = vmatpush3.bf16.msra.mxu0 %v3433_v27  ;;  %3159 = vmatpush3.bf16.msra.mxu1 %v3434_v28 }
 0x1b8   : > { %3020 = vmatprep.subr.bf16.mxu0 %v3541_v1  ;;  %3160 = vmatprep.subr.bf16.mxu1 %v3541_v1 }
 0x1bb   : > { %3021 = vmatpush3.bf16.msra.mxu0 %v3435_v29  ;;  %3161 = vmatpush3.bf16.msra.mxu1 %v3436_v30 }
 0x1bc   : > { %3022 = vmatprep.subr.bf16.mxu0 %v3541_v1  ;;  %3162 = vmatprep.subr.bf16.mxu1 %v3541_v1 }
 0x1bf   : > { %3023 = vmatpush3.bf16.msra.mxu0 %v3437_v31  ;;  %3163 = vmatpush3.bf16.msra.mxu1 %v3438_v32 }
 0x1c0   : > { %3024 = vmatprep.subr.bf16.mxu0 %v3541_v1  ;;  %3164 = vmatprep.subr.bf16.mxu1 %v3541_v1 }
 0x1c3   : > { %3025 = vmatpush3.bf16.msra.mxu0 %v3439_v33  ;;  %3165 = vmatpush3.bf16.msra.mxu1 %v3440_v34 }
 0x1c4   : > { %3026 = vmatprep.subr.bf16.mxu0 %v3541_v1  ;;  %3166 = vmatprep.subr.bf16.mxu1 %v3541_v1 }
 0x1c7   : > { %3027 = vmatpush3.bf16.msra.mxu0 %v3441_v35  ;;  %3167 = vmatpush3.bf16.msra.mxu1 %v3442_v36 }
 0x1c8   : > { %3028 = vmatprep.subr.bf16.mxu0 %v3541_v1  ;;  %3168 = vmatprep.subr.bf16.mxu1 %v3541_v1 }
 0x1cb   : > { %3029 = vmatpush3.bf16.msra.mxu0 %v3443_v37  ;;  %3169 = vmatpush3.bf16.msra.mxu1 %v3444_v38 }
 0x1cc   : > { %3034 = vmatprep.subr.bf16.mxu0 %v3541_v1  ;;  %3174 = vmatprep.subr.bf16.mxu1 %v3541_v1 }
 0x1ce   : > { %3031 = vmatmul.mubr.bf16.vlgmr.msra.gmra.mrb[12].mxu0 %v1041_v43  ;;  %3171 = vmatmul.mubr.bf16.vlgmr.msra.gmra.mrb[0].mxu1 %v1797_v44 }
 0x1cf   : > { %3035 = vmatpush3.bf16.msra.mxu0 %v3445_v41  ;;  %3175 = vmatpush3.bf16.msra.mxu1 %v3446_v42 }
 0x1d0   : > { %3036 = vmatprep.subr.bf16.mxu0 %v3541_v1  ;;  %3176 = vmatprep.subr.bf16.mxu1 %v3541_v1 }
 0x1d1   : > { %3050 = vmatprep.mubr.msk.bf16.mxu0 %vm3542_vm0, %v3541_v1  ;;  %3190 = vmatprep.mubr.msk.bf16.mxu1 %vm3542_vm0, %v3541_v1 }
 0x1d3   : > { %3037 = vmatpush3.bf16.msra.mxu0 %v3447_v45  ;;  %3177 = vmatpush3.bf16.msra.mxu1 %v3448_v46 }
 0x1d4   : > { %3038 = vmatprep.subr.bf16.mxu0 %v3541_v1  ;;  %3178 = vmatprep.subr.bf16.mxu1 %v3541_v1 }
 0x1d7   : > { %3039 = vmatpush3.bf16.msra.mxu0 %v3449_v47  ;;  %3179 = vmatpush3.bf16.msra.mxu1 %v3450_v48 }
 0x1d8   : > { %3040 = vmatprep.subr.bf16.mxu0 %v3541_v1  ;;  %3180 = vmatprep.subr.bf16.mxu1 %v3541_v1 }
 0x1db   : > { %3041 = vmatpush3.bf16.msra.mxu0 %v3451_v49  ;;  %3181 = vmatpush3.bf16.msra.mxu1 %v3452_v50 }
 0x1dc   : > { %3042 = vmatprep.subr.bf16.mxu0 %v3541_v1  ;;  %3182 = vmatprep.subr.bf16.mxu1 %v3541_v1 }
 0x1df   : > { %3043 = vmatpush3.bf16.msra.mxu0 %v3453_v51  ;;  %3183 = vmatpush3.bf16.msra.mxu1 %v3454_v52 }
 0x1e0   : > { %3044 = vmatprep.subr.bf16.mxu0 %v3541_v1  ;;  %3184 = vmatprep.subr.bf16.mxu1 %v3541_v1 }
 0x1e3   : > { %3045 = vmatpush3.bf16.msra.mxu0 %v3455_v53  ;;  %3185 = vmatpush3.bf16.msra.mxu1 %v3456_v54 }
 0x1e4   : > { %3046 = vmatprep.subr.bf16.mxu0 %v3541_v1  ;;  %3186 = vmatprep.subr.bf16.mxu1 %v3541_v1 }
 0x1e7   : > { %3047 = vmatpush3.bf16.msra.mxu0 %v3457_v55  ;;  %3187 = vmatpush3.bf16.msra.mxu1 %v3458_v56 }
 0x1e8   : > { %3048 = vmatprep.subr.bf16.mxu0 %v3541_v1  ;;  %3188 = vmatprep.subr.bf16.mxu1 %v3541_v1 }
 0x1eb   : > { %3049 = vmatpush3.bf16.msra.mxu0 %v3459_v57  ;;  %3189 = vmatpush3.bf16.msra.mxu1 %v3460_v58 }
 0x1ec   : > { %3194 = vmatprep.subr.bf16.mxu1 %v3541_v1 }
 0x1ee   : > { %3051 = vmatmul.mubr.bf16.vlgmr.msra.gmra.mrb[12].mxu0 %v1149_v62  ;;  %3191 = vmatmul.mubr.bf16.vlgmr.msra.gmra.mrb[0].mxu1 %v1905_v63 }
 0x1ef   : > { %3195 = vmatpush3.bf16.msra.mxu1 %v3461_v61  ;;  %3210 = vmatprep.mubr.msk.bf16.mxu1 %vm3542_vm0, %v3541_v1 }
 0x1f0   : > { %3196 = vmatprep.subr.bf16.mxu1 %v3541_v1 }
 0x1f3   : > { %3197 = vmatpush3.bf16.msra.mxu1 %v3462_v0 }
 0x1f4   : > { %3198 = vmatprep.subr.bf16.mxu1 %v3541_v1 }
 0x1f7   : > { %3199 = vmatpush3.bf16.msra.mxu1 %v3463_v2 }
 0x1f8   : > { %3200 = vmatprep.subr.bf16.mxu1 %v3541_v1 }
 0x1fb   : > { %3201 = vmatpush3.bf16.msra.mxu1 %v3464_v3 }
 0x1fc   : > { %3202 = vmatprep.subr.bf16.mxu1 %v3541_v1 }
 0x1ff   : > { %3203 = vmatpush3.bf16.msra.mxu1 %v3465_v4 }
 0x200   : > { %3204 = vmatprep.subr.bf16.mxu1 %v3541_v1 }
 0x203   : > { %3205 = vmatpush3.bf16.msra.mxu1 %v3466_v5 }
 0x204   : > { %3206 = vmatprep.subr.bf16.mxu1 %v3541_v1 }
 0x207   : > { %3207 = vmatpush3.bf16.msra.mxu1 %v3467_v6 }
 0x208   : > { %3208 = vmatprep.subr.bf16.mxu1 %v3541_v1 }
 0x20b   : > { %3209 = vmatpush3.bf16.msra.mxu1 %v3468_v7 }
 0x20c   : > { %3214 = vmatprep.subr.bf16.mxu1 %v3541_v1 }
 0x20e   : > { %3211 = vmatmul.mubr.bf16.vlgmr.msra.gmra.mrb[0].mxu1 %v2013_v10 }
 0x20f   : > { %3215 = vmatpush3.bf16.msra.mxu1 %v3469_v9  ;;  %3230 = vmatprep.mubr.msk.bf16.mxu1 %vm3542_vm0, %v3541_v1 }
 0x210   : > { %3216 = vmatprep.subr.bf16.mxu1 %v3541_v1 }
 0x213   : > { %3217 = vmatpush3.bf16.msra.mxu1 %v3470_v11 }
 0x214   : > { %3218 = vmatprep.subr.bf16.mxu1 %v3541_v1 }
 0x217   : > { %3219 = vmatpush3.bf16.msra.mxu1 %v3471_v12 }
 0x218   : > { %3220 = vmatprep.subr.bf16.mxu1 %v3541_v1 }
 0x21b   : > { %3221 = vmatpush3.bf16.msra.mxu1 %v3472_v13 }
 0x21c   : > { %3222 = vmatprep.subr.bf16.mxu1 %v3541_v1 }
 0x21f   : > { %3223 = vmatpush3.bf16.msra.mxu1 %v3473_v14 }
 0x220   : > { %3224 = vmatprep.subr.bf16.mxu1 %v3541_v1 }
 0x223   : > { %3225 = vmatpush3.bf16.msra.mxu1 %v3474_v15 }
 0x224   : > { %3226 = vmatprep.subr.bf16.mxu1 %v3541_v1 }
 0x227   : > { %3227 = vmatpush3.bf16.msra.mxu1 %v3475_v16 }
 0x228   : > { %3228 = vmatprep.subr.bf16.mxu1 %v3541_v1 }
 0x22b   : > { %3229 = vmatpush3.bf16.msra.mxu1 %v3476_v17 }
 0x22e   : > { %3231 = vmatmul.mubr.bf16.vlgmr.msra.gmra.mrb[0].mxu1 %v2121_v19 }
 0x2c1   : > { %v1249_v20 = vpop.f32.mrb[12].mxu0 }
 0x2c2   : > { %v3052_v21 = vpop.f32.mrb[13].mxu0  ;;  %v3234_v25 = vadd.f32 %v1249_v20, %v500_v24 }
 0x2c3   : > { %v1252_v22 = vpop.f32.mrb[14].mxu0 }
 0x2c4   : > { %v3053_v23 = vpop.f32.mrb[15].mxu0 }
 0x301   : > { %v2221_v26 = vpop.f32.mrb[0].mxu1 }
 0x302   : > { %v3235_v1 = vadd.f32 %v3234_v25, %v2221_v26  ;;  %v3232_v27 = vpop.f32.mrb[1].mxu1 }
 0x303   : > { %v2224_v28 = vpop.f32.mrb[2].mxu1 }
 0x304   : > { %2228 = vst [vmem:[%s216_s14] sm:$0x1] %v3235_v1  ;;  %v3233_v29 = vpop.f32.mrb[3].mxu1 }
 0x305   : > { %3490 = shalt.err (!%p3487_p3)
}
 0x306   : > { %s3491_s8 = scalar_lea.hbm %s4259_s25, 16  ;;  %s3495_s11 = scalar_lea.hbm %s4306_s5, 32 }
 0x307   : > { %p3492_p4 = scmp.ne.s32.totalorder %s4259_s25, %s3491_s8  ;;  %p3496_p9 = scmp.lt.u32.totalorder %s4259_s25, %s4306_s5 }
 0x308   : > { %p3497_p10 = scmp.lt.u32.totalorder %s3495_s11, %s3491_s8  ;;  %p3499_p12 = scmp.lt.u32.totalorder %s3491_s8, %s4259_s25 }
 0x309   : > { %p3493_p7 = pnand %p3492_p4, %p3612_p5 }
 0x30a   : > { %p3498_p11 = por %p3497_p10, %p3496_p9 }
 0x30b   : > { %p3494_p8 = pneg %p3493_p7 }
 0x30c   : > { %p3500_p13 = por %p3499_p12, %p3498_p11 }
 0x30e   : > { %p3501_p0 = pnand %p3500_p13, %p3494_p8 }
 0x310   : > { %3504 = shalt.err (!%p3501_p0)
}
 0x311   : > { %3293 = dma.vmem_to_hbm [thread:$0]  (%p3612_p5), %s4261_s15, 16, %s4259_s25, %s2230_s22  }
 0x312 PF: > { %p3299_p1 = scmp.ge.s32.totalorder %s3539_s21, 2  ;;  %s2254_s13 = sand.u32 1, %s3527_s18  }
 0x313   : > { %s2255_s14 = scalar_lea.sflag [#allocation4], %s2254_s13 }
 0x314   : > { %p3296_p2 = pnand %p3299_p1, %p3616_p6 }
 0x316   : > { %3522 = dma.done.wait (!%p3296_p2), %s2255_s14, 16  }
 0x317   : > { %3524 = vsyncadd (!%p3296_p2), %s2255_s14, 4294967280  ;;  %p15_p3 = scmp.ge.s32.totalorder %s3599_s24, 4   ;;  %s4309_s18 = smov %s3531_s19 }
 0x318   : > { %s4310_s19 = smov %s3535_s20  ;;  %s4311_s20 = smov %s3610_s27 }
 0x319   : > { %s4312_s21 = smov %s3599_s24  ;;  %17 = sbr.rel (!%p15_p3) target bundleno = 3 (0x3), region = 92 }
 0x320   :  { %2259 = vsyncpa [#allocation4], 1 }
 0x321   :  { %2261 = vsyncpa [#allocation4 + $0x1], 1 }

</bundles_post_ra>
